<compile_context>
chip_gen: v5e
topology: v5e:2x2
jax: 0.10.0
libtpu: 0.0.40
codegen_flags: <defaults>
</compile_context>

<pallas_src>
import jax
import jax.numpy as jnp
from jax import lax
from jax.experimental import pallas as pl
from jax.experimental.pallas import tpu as pltpu

BN_EPS = 1e-5


def _erf(z):
    # Abramowitz & Stegun 7.1.26 rational approximation, max abs err ~1.5e-7.
    a1, a2, a3, a4, a5 = 0.254829592, -0.284496736, 1.421413741, -1.453152027, 1.061405429
    p = 0.3275911
    az = jnp.abs(z)
    # EUP approx reciprocal instead of an f32 VALU divide (frees VALU slots).
    t = pl.reciprocal(1.0 + p * az, approx=True)
    poly = t * (a1 + t * (a2 + t * (a3 + t * (a4 + t * a5))))
    e = 1.0 - poly * jnp.exp(-az * az)
    return jnp.where(z < 0, -e, e)


def _gelu(x):
    # Exact-form (erf-based) GELU, matching nn.GELU() default.
    return 0.5 * x * (1.0 + _erf(x * 0.7071067811865476))


def _make_kernel(N, C, H, W):
    C2 = 2 * C
    NH = N * H
    LANES = C2 * W
    inv_cnt = 1.0 / float(N * H * W)

    # Row indices inside the packed parameter buffer (see _pack_params).
    (I_G1, I_BE1, I_B1, I_G2, I_BE2, I_DWB, I_G3, I_BE3, I_B3) = range(9)
    I_R1 = 9
    I_DW = I_R1 + C
    I_R3 = I_DW + 9

    pow2_w = (W & (W - 1)) == 0
    pow2_h = (H & (H - 1)) == 0

    def kernel(xt_ref, p_ref, o_ref):
        def prow(i):                                   # (1, LANES) parameter row
            return p_ref[pl.ds(i, 1), :]

        # ---- hoisted loop-invariant index vectors and masks -----------------
        lane = lax.broadcasted_iota(jnp.int32, (1, LANES), 1)
        w_in = (lane & (W - 1)) if pow2_w else (lane % W)          # lane pos in group
        ri = lax.broadcasted_iota(jnp.int32, (NH, LANES), 0)
        h_in = (ri & (H - 1)) if pow2_h else (ri % H)              # row pos in sample

        # Butterfly masks for the within-group lane all-reduce.
        bf_mask = {}
        off = W // 2
        while off >= 1:
            bf_mask[off] = w_in < (W - off)
            off //= 2

        # +/-1 shift masks for the depthwise 3x3.
        col_mask = {1: w_in <= (W - 2), -1: w_in >= 1}
        row_mask = {1: h_in <= (H - 2), -1: h_in >= 1}

        # ---- helpers --------------------------------------------------------
        def group_allsum(rows):
            # All-reduce within every W-lane group of an (R, LANES) array:
            # log2(W)-step butterfly of lane rolls (XLU) + selects (VPU).
            acc = rows
            off = W // 2
            while off >= 1:
                lo = pltpu.roll(acc, LANES - off, axis=1)   # lane l <- l + off
                hi = pltpu.roll(acc, W - off, axis=1)       # lane l <- l + off - W
                acc = acc + jnp.where(bf_mask[off], lo, hi)
                off //= 2
            return acc

        def bn_gelu(xs, grow, brow):
            # Train-mode BN (biased variance over (N, H, W) per channel) + GELU.
            # The two moments share ONE butterfly: stack sum and sum-of-squares
            # rows into a (2, LANES) array and reduce them together.
            s1 = jnp.sum(xs, axis=0, keepdims=True)
            s2 = jnp.sum(xs * xs, axis=0, keepdims=True)
            red = group_allsum(jnp.concatenate([s1, s2], axis=0)) * inv_cnt
            m = red[0:1, :]
            m2 = red[1:2, :]
            a = grow * lax.rsqrt(m2 - m * m + BN_EPS)
            b = brow - m * a
            return _gelu(xs * a + b)

        def shift_rows(xs, di):
            # out[r, :] = xs[r + di, :] inside each sample's H block, else 0.
            if di == 0:
                return xs
            y = pltpu.roll(xs, (-di) % NH, axis=0)
            return jnp.where(row_mask[di], y, 0.0)

        def shift_cols(xs, dj):
            # out[:, l] = xs[:, l + dj] inside each channel's W-lane group, else 0.
            if dj == 0:
                return xs
            y = pltpu.roll(xs, (-dj) % LANES, axis=1)
            return jnp.where(col_mask[dj], y, 0.0)

        # ---- lane-dense input slab (packed by the wrapper): channel pattern
        #      along lane groups is [0..C-1, 0..C-1] (duplicated).
        xt = xt_ref[...]                                              # (NH, LANES)

        # ---- stage 1: BN1 + GELU (duplicated groups share identical stats).
        h1 = bn_gelu(xt, prow(I_G1), prow(I_BE1))

        # ---- 1x1 conv (n -> 2n): lane-group rolls + full-width FMAs.
        y = h1 * prow(I_R1)
        for k in range(1, C):
            y = y + pltpu.roll(h1, k * W, axis=1) * prow(I_R1 + k)
        y = y + prow(I_B1)

        # ---- BN2 + GELU.
        s = bn_gelu(y, prow(I_G2), prow(I_BE2))

        # ---- depthwise 3x3, padding 1: masked sublane/lane rolls + 9 FMAs.
        d = None
        for di in (-1, 0, 1):
            rs = shift_rows(s, di)
            for dj in (-1, 0, 1):
                term = shift_cols(rs, dj) * prow(I_DW + (di + 1) * 3 + (dj + 1))
                d = term if d is None else d + term
        d = d + prow(I_DWB)

        # ---- BN3 + GELU.
        h3 = bn_gelu(d, prow(I_G3), prow(I_BE3))

        # ---- 1x1 conv (2n -> n) kept in the duplicated-group layout,
        #      plus bias and the residual (xt holds the original input).
        z = h3 * prow(I_R3)
        for k in range(1, C2):
            z = z + pltpu.roll(h3, k * W, axis=1) * prow(I_R3 + k)
        z = z + prow(I_B3) + xt

        # ---- lane-dense output: full (NH, LANES) slab, unmasked full-width
        #      stores; the wrapper unpacks to NCHW.
        o_ref[...] = z

    return kernel


def _pack_params(params, C, W):
    """Pre-broadcast every per-channel scalar to a per-lane row; one buffer."""
    C2 = 2 * C
    g = jnp.arange(C2)
    rep = lambda v: jnp.repeat(v.astype(jnp.float32), W)          # (C2,) -> (C2*W,)

    rows = [
        rep(params["g1"][g % C]),      # I_G1
        rep(params["be1"][g % C]),     # I_BE1
        rep(params["b1"]),             # I_B1
        rep(params["g2"]),             # I_G2
        rep(params["be2"]),            # I_BE2
        rep(params["dwb"]),            # I_DWB
        rep(params["g3"]),             # I_G3
        rep(params["be3"]),            # I_BE3
        rep(params["b3"][g % C]),      # I_B3
    ]
    # 1x1 expansion: the roll-by-(k*W) term at lane group g multiplies input
    # channel (g - k) mod C.
    rows += [rep(params["w1"][g, (g - k) % C]) for k in range(C)]
    # depthwise 3x3 taps, row-major (ki, kj).
    rows += [rep(params["dw"][:, 0, ki, kj]) for ki in range(3) for kj in range(3)]
    # 1x1 projection: the roll-by-(k*W) term at lane group g multiplies
    # channel (g - k) mod C2 and contributes to output channel g mod C.
    rows += [rep(params["w3"][g % C, (g - k) % C2]) for k in range(C2)]

    P = jnp.stack(rows)                                           # (9+C+9+C2, C2*W)
    pad = (-P.shape[0]) % 8
    if pad:
        P = jnp.concatenate([P, jnp.zeros((pad, P.shape[1]), jnp.float32)], axis=0)
    return P


def mobile_block_pallas(x, params):
    N, C, H, W = x.shape
    assert W & (W - 1) == 0, "lane-group butterfly reduce assumes W is a power of 2"
    C2 = 2 * C
    NH = N * H
    LANES = C2 * W

    P = _pack_params(params, C, W)

    # Lane-dense pack in plain XLA: NCHW -> (N*H, C*W), channels along lane
    # groups, then duplicate to the [0..C-1, 0..C-1] pattern -> (N*H, 2C*W).
    xt = x.astype(jnp.float32).transpose(0, 2, 1, 3).reshape(NH, C * W)
    xt = jnp.tile(xt, (1, C2 // C))

    kernel = _make_kernel(N, C, H, W)
    vmem = lambda: pl.BlockSpec(memory_space=pltpu.MemorySpace.VMEM)

    # Single block: the whole problem and all intermediates fit in VMEM, and
    # train-mode BN statistics are global reductions over (N, H, W).
    z = pl.pallas_call(
        kernel,
        out_shape=jax.ShapeDtypeStruct((NH, LANES), jnp.float32),
        in_specs=[vmem(), vmem()],
        out_specs=vmem(),
    )(xt, P)

    # Unpack in plain XLA: the first C lane groups hold output channels 0..C-1.
    return z[:, :C * W].reshape(N, H, C, W).transpose(0, 2, 1, 3)


def mobile_block_reference(x, params):
    """Pure-JAX reference matching the PyTorch forward (train-mode BN)."""
    C = x.shape[1]
    C2 = 2 * C
    dn = ("NCHW", "OIHW", "NCHW")

    def bn(h, g, b):
        m = jnp.mean(h, axis=(0, 2, 3), keepdims=True)
        v = jnp.mean((h - m) ** 2, axis=(0, 2, 3), keepdims=True)
        return g[None, :, None, None] * (h - m) / jnp.sqrt(v + BN_EPS) + b[None, :, None, None]

    gelu = lambda h: jax.nn.gelu(h, approximate=False)

    h = gelu(bn(x, params["g1"], params["be1"]))
    h = lax.conv_general_dilated(h, params["w1"][:, :, None, None], (1, 1), "VALID",
                                 dimension_numbers=dn,
                                 precision=lax.Precision.HIGHEST) + params["b1"][None, :, None, None]
    h = gelu(bn(h, params["g2"], params["be2"]))
    h = lax.conv_general_dilated(h, params["dw"], (1, 1), ((1, 1), (1, 1)),
                                 dimension_numbers=dn, feature_group_count=C2,
                                 precision=lax.Precision.HIGHEST) + params["dwb"][None, :, None, None]
    h = gelu(bn(h, params["g3"], params["be3"]))
    h = lax.conv_general_dilated(h, params["w3"][:, :, None, None], (1, 1), "VALID",
                                 dimension_numbers=dn,
                                 precision=lax.Precision.HIGHEST) + params["b3"][None, :, None, None]
    return h + x


def init_params(key, n):
    C, C2 = n, 2 * n
    ks = jax.random.split(key, 12)

    def nrm(k, shape, scale=1.0):
        return (scale * jax.random.normal(k, shape)).astype(jnp.float32)

    return {
        "g1": 1.0 + 0.1 * nrm(ks[0], (C,)),
        "be1": 0.1 * nrm(ks[1], (C,)),
        "w1": nrm(ks[2], (C2, C), 1.0 / (C ** 0.5)),
        "b1": 0.1 * nrm(ks[3], (C2,)),
        "g2": 1.0 + 0.1 * nrm(ks[4], (C2,)),
        "be2": 0.1 * nrm(ks[5], (C2,)),
        "dw": nrm(ks[6], (C2, 1, 3, 3), 1.0 / 3.0),   # depthwise, OIHW with I=1
        "dwb": 0.1 * nrm(ks[7], (C2,)),
        "g3": 1.0 + 0.1 * nrm(ks[8], (C2,)),
        "be3": 0.1 * nrm(ks[9], (C2,)),
        "w3": nrm(ks[10], (C, C2), 1.0 / (C2 ** 0.5)),
        "b3": 0.1 * nrm(ks[11], (C,)),
    }


if __name__ == "__main__":
    key = jax.random.PRNGKey(0)
    kx, kp = jax.random.split(key)

    n = 4                       # MobileBlock(n=4)
    N, H, W = 2, 16, 16         # small NCHW input: (2, 4, 16, 16)
    x = jax.random.normal(kx, (N, n, H, W), dtype=jnp.float32)
    params = init_params(kp, n)

    out = jax.jit(mobile_block_pallas)(x, params)
    out = jax.block_until_ready(out)

    ref = mobile_block_reference(x, params)
    err = float(jnp.max(jnp.abs(out - ref)))
    if not (err < 3e-2):
        raise SystemExit("kernel/reference mismatch: max abs err = %g" % err)

    print("KERNEL_OK")
</pallas_src>

<mosaic_0001>
module attributes {stable_mosaic.version = 11 : i64} {
  func.func @kernel(%arg0: memref<32x128xf32, #tpu.memory_space<vmem>>, %arg1: memref<32x128xf32, #tpu.memory_space<vmem>>, %arg2: memref<32x128xf32, #tpu.memory_space<vmem>>) attributes {dimension_semantics = [], scalar_prefetch = 0 : i64, scratch_operands = 0 : i64, tpu.core_type = #tpu.core_type<tc>} {
    %0 = tpu.iota {dimensions = array<i32: 1>} : vector<1x128xi32>
    %c15_i32 = arith.constant 15 : i32
    %1 = vector.broadcast %c15_i32 : i32 to vector<1x128xi32>
    %2 = arith.andi %0, %1 : vector<1x128xi32>
    %3 = tpu.iota {dimensions = array<i32: 0>} : vector<32x128xi32>
    %c15_i32_0 = arith.constant 15 : i32
    %4 = vector.broadcast %c15_i32_0 : i32 to vector<32x128xi32>
    %5 = arith.andi %3, %4 : vector<32x128xi32>
    %c8_i32 = arith.constant 8 : i32
    %6 = vector.broadcast %c8_i32 : i32 to vector<1x128xi32>
    %7 = arith.cmpi slt, %2, %6 : vector<1x128xi32>
    %c12_i32 = arith.constant 12 : i32
    %8 = vector.broadcast %c12_i32 : i32 to vector<1x128xi32>
    %9 = arith.cmpi slt, %2, %8 : vector<1x128xi32>
    %c14_i32 = arith.constant 14 : i32
    %10 = vector.broadcast %c14_i32 : i32 to vector<1x128xi32>
    %11 = arith.cmpi slt, %2, %10 : vector<1x128xi32>
    %c15_i32_1 = arith.constant 15 : i32
    %12 = vector.broadcast %c15_i32_1 : i32 to vector<1x128xi32>
    %13 = arith.cmpi slt, %2, %12 : vector<1x128xi32>
    %c14_i32_2 = arith.constant 14 : i32
    %14 = vector.broadcast %c14_i32_2 : i32 to vector<1x128xi32>
    %15 = arith.cmpi sle, %2, %14 : vector<1x128xi32>
    %c1_i32 = arith.constant 1 : i32
    %16 = vector.broadcast %c1_i32 : i32 to vector<1x128xi32>
    %17 = arith.cmpi sge, %2, %16 : vector<1x128xi32>
    %c14_i32_3 = arith.constant 14 : i32
    %18 = vector.broadcast %c14_i32_3 : i32 to vector<32x128xi32>
    %19 = arith.cmpi sle, %5, %18 : vector<32x128xi32>
    %c1_i32_4 = arith.constant 1 : i32
    %20 = vector.broadcast %c1_i32_4 : i32 to vector<32x128xi32>
    %21 = arith.cmpi sge, %5, %20 : vector<32x128xi32>
    %c0 = arith.constant 0 : index
    %c0_5 = arith.constant 0 : index
    %22 = vector.load %arg0[%c0, %c0_5] : memref<32x128xf32, #tpu.memory_space<vmem>>, vector<32x128xf32>
    %c0_6 = arith.constant 0 : index
    %c0_7 = arith.constant 0 : index
    %23 = vector.load %arg1[%c0_6, %c0_7] : memref<32x128xf32, #tpu.memory_space<vmem>>, vector<1x128xf32>
    %c1 = arith.constant 1 : index
    %c0_8 = arith.constant 0 : index
    %24 = vector.load %arg1[%c1, %c0_8] : memref<32x128xf32, #tpu.memory_space<vmem>>, vector<1x128xf32>
    %cst = arith.constant dense<0.000000e+00> : vector<128xf32>
    %25 = vector.multi_reduction <add>, %22, %cst [0] : vector<32x128xf32> to vector<128xf32>
    %26 = vector.shape_cast %25 : vector<128xf32> to vector<1x128xf32>
    %27 = arith.mulf %22, %22 : vector<32x128xf32>
    %cst_9 = arith.constant dense<0.000000e+00> : vector<128xf32>
    %28 = vector.multi_reduction <add>, %27, %cst_9 [0] : vector<32x128xf32> to vector<128xf32>
    %29 = vector.shape_cast %28 : vector<128xf32> to vector<1x128xf32>
    %30 = tpu.concatenate %26, %29 in 0 : vector<1x128xf32>, vector<1x128xf32> -> vector<2x128xf32>
    %c120_i32 = arith.constant 120 : i32
    %31 = tpu.dynamic_rotate %30 by %c120_i32 dim 1 : vector<2x128xf32>, i32 -> vector<2x128xf32>
    %c8_i32_10 = arith.constant 8 : i32
    %32 = tpu.dynamic_rotate %30 by %c8_i32_10 dim 1 : vector<2x128xf32>, i32 -> vector<2x128xf32>
    %33 = vector.shape_cast %7 : vector<1x128xi1> to vector<1x128xi1>
    %34 = vector.broadcast %33 : vector<1x128xi1> to vector<2x128xi1>
    %35 = arith.select %34, %31, %32 : vector<2x128xi1>, vector<2x128xf32>
    %36 = arith.addf %30, %35 : vector<2x128xf32>
    %c124_i32 = arith.constant 124 : i32
    %37 = tpu.dynamic_rotate %36 by %c124_i32 dim 1 : vector<2x128xf32>, i32 -> vector<2x128xf32>
    %c12_i32_11 = arith.constant 12 : i32
    %38 = tpu.dynamic_rotate %36 by %c12_i32_11 dim 1 : vector<2x128xf32>, i32 -> vector<2x128xf32>
    %39 = vector.shape_cast %9 : vector<1x128xi1> to vector<1x128xi1>
    %40 = vector.broadcast %39 : vector<1x128xi1> to vector<2x128xi1>
    %41 = arith.select %40, %37, %38 : vector<2x128xi1>, vector<2x128xf32>
    %42 = arith.addf %36, %41 : vector<2x128xf32>
    %c126_i32 = arith.constant 126 : i32
    %43 = tpu.dynamic_rotate %42 by %c126_i32 dim 1 : vector<2x128xf32>, i32 -> vector<2x128xf32>
    %c14_i32_12 = arith.constant 14 : i32
    %44 = tpu.dynamic_rotate %42 by %c14_i32_12 dim 1 : vector<2x128xf32>, i32 -> vector<2x128xf32>
    %45 = vector.shape_cast %11 : vector<1x128xi1> to vector<1x128xi1>
    %46 = vector.broadcast %45 : vector<1x128xi1> to vector<2x128xi1>
    %47 = arith.select %46, %43, %44 : vector<2x128xi1>, vector<2x128xf32>
    %48 = arith.addf %42, %47 : vector<2x128xf32>
    %c127_i32 = arith.constant 127 : i32
    %49 = tpu.dynamic_rotate %48 by %c127_i32 dim 1 : vector<2x128xf32>, i32 -> vector<2x128xf32>
    %c15_i32_13 = arith.constant 15 : i32
    %50 = tpu.dynamic_rotate %48 by %c15_i32_13 dim 1 : vector<2x128xf32>, i32 -> vector<2x128xf32>
    %51 = vector.shape_cast %13 : vector<1x128xi1> to vector<1x128xi1>
    %52 = vector.broadcast %51 : vector<1x128xi1> to vector<2x128xi1>
    %53 = arith.select %52, %49, %50 : vector<2x128xi1>, vector<2x128xf32>
    %54 = arith.addf %48, %53 : vector<2x128xf32>
    %cst_14 = arith.constant 0.001953125 : f32
    %55 = vector.broadcast %cst_14 : f32 to vector<2x128xf32>
    %56 = arith.mulf %54, %55 : vector<2x128xf32>
    %57 = vector.extract_strided_slice %56 {offsets = [0, 0], sizes = [1, 128], strides = [1, 1]} : vector<2x128xf32> to vector<1x128xf32>
    %58 = vector.extract_strided_slice %56 {offsets = [1, 0], sizes = [1, 128], strides = [1, 1]} : vector<2x128xf32> to vector<1x128xf32>
    %59 = arith.mulf %57, %57 : vector<1x128xf32>
    %60 = arith.subf %58, %59 : vector<1x128xf32>
    %cst_15 = arith.constant 9.99999974E-6 : f32
    %61 = vector.broadcast %cst_15 : f32 to vector<1x128xf32>
    %62 = arith.addf %60, %61 : vector<1x128xf32>
    %63 = math.rsqrt %62 : vector<1x128xf32>
    %64 = arith.mulf %23, %63 : vector<1x128xf32>
    %65 = arith.mulf %57, %64 : vector<1x128xf32>
    %66 = arith.subf %24, %65 : vector<1x128xf32>
    %67 = vector.broadcast %64 : vector<1x128xf32> to vector<32x128xf32>
    %68 = arith.mulf %22, %67 : vector<32x128xf32>
    %69 = vector.broadcast %66 : vector<1x128xf32> to vector<32x128xf32>
    %70 = arith.addf %68, %69 : vector<32x128xf32>
    %cst_16 = arith.constant 5.000000e-01 : f32
    %71 = vector.broadcast %cst_16 : f32 to vector<32x128xf32>
    %72 = arith.mulf %71, %70 : vector<32x128xf32>
    %cst_17 = arith.constant 0.707106769 : f32
    %73 = vector.broadcast %cst_17 : f32 to vector<32x128xf32>
    %74 = arith.mulf %70, %73 : vector<32x128xf32>
    %75 = math.absf %74 : vector<32x128xf32>
    %cst_18 = arith.constant 0.327591091 : f32
    %76 = vector.broadcast %cst_18 : f32 to vector<32x128xf32>
    %77 = arith.mulf %76, %75 : vector<32x128xf32>
    %cst_19 = arith.constant 1.000000e+00 : f32
    %78 = vector.broadcast %cst_19 : f32 to vector<32x128xf32>
    %79 = arith.addf %78, %77 : vector<32x128xf32>
    %80 = tpu.reciprocal %79 {approx = true} : vector<32x128xf32> -> vector<32x128xf32>
    %cst_20 = arith.constant 1.06140542 : f32
    %81 = vector.broadcast %cst_20 : f32 to vector<32x128xf32>
    %82 = arith.mulf %80, %81 : vector<32x128xf32>
    %cst_21 = arith.constant -1.45315206 : f32
    %83 = vector.broadcast %cst_21 : f32 to vector<32x128xf32>
    %84 = arith.addf %83, %82 : vector<32x128xf32>
    %85 = arith.mulf %80, %84 : vector<32x128xf32>
    %cst_22 = arith.constant 1.42141378 : f32
    %86 = vector.broadcast %cst_22 : f32 to vector<32x128xf32>
    %87 = arith.addf %86, %85 : vector<32x128xf32>
    %88 = arith.mulf %80, %87 : vector<32x128xf32>
    %cst_23 = arith.constant -0.284496725 : f32
    %89 = vector.broadcast %cst_23 : f32 to vector<32x128xf32>
    %90 = arith.addf %89, %88 : vector<32x128xf32>
    %91 = arith.mulf %80, %90 : vector<32x128xf32>
    %cst_24 = arith.constant 0.254829586 : f32
    %92 = vector.broadcast %cst_24 : f32 to vector<32x128xf32>
    %93 = arith.addf %92, %91 : vector<32x128xf32>
    %94 = arith.mulf %80, %93 : vector<32x128xf32>
    %cst_25 = arith.constant 0.000000e+00 : f32
    %95 = vector.broadcast %cst_25 : f32 to vector<32x128xf32>
    %96 = arith.subf %95, %75 : vector<32x128xf32>
    %97 = arith.mulf %96, %75 : vector<32x128xf32>
    %98 = math.exp %97 : vector<32x128xf32>
    %99 = arith.mulf %94, %98 : vector<32x128xf32>
    %cst_26 = arith.constant 1.000000e+00 : f32
    %100 = vector.broadcast %cst_26 : f32 to vector<32x128xf32>
    %101 = arith.subf %100, %99 : vector<32x128xf32>
    %cst_27 = arith.constant 0.000000e+00 : f32
    %102 = vector.broadcast %cst_27 : f32 to vector<32x128xf32>
    %103 = arith.cmpf olt, %74, %102 : vector<32x128xf32>
    %cst_28 = arith.constant 0.000000e+00 : f32
    %104 = vector.broadcast %cst_28 : f32 to vector<32x128xf32>
    %105 = arith.subf %104, %101 : vector<32x128xf32>
    %106 = arith.select %103, %105, %101 : vector<32x128xi1>, vector<32x128xf32>
    %cst_29 = arith.constant 1.000000e+00 : f32
    %107 = vector.broadcast %cst_29 : f32 to vector<32x128xf32>
    %108 = arith.addf %107, %106 : vector<32x128xf32>
    %109 = arith.mulf %72, %108 : vector<32x128xf32>
    %c9 = arith.constant 9 : index
    %c0_30 = arith.constant 0 : index
    %110 = vector.load %arg1[%c9, %c0_30] : memref<32x128xf32, #tpu.memory_space<vmem>>, vector<1x128xf32>
    %111 = vector.broadcast %110 : vector<1x128xf32> to vector<32x128xf32>
    %112 = arith.mulf %109, %111 : vector<32x128xf32>
    %c16_i32 = arith.constant 16 : i32
    %113 = tpu.dynamic_rotate %109 by %c16_i32 dim 1 : vector<32x128xf32>, i32 -> vector<32x128xf32>
    %c10 = arith.constant 10 : index
    %c0_31 = arith.constant 0 : index
    %114 = vector.load %arg1[%c10, %c0_31] : memref<32x128xf32, #tpu.memory_space<vmem>>, vector<1x128xf32>
    %115 = vector.broadcast %114 : vector<1x128xf32> to vector<32x128xf32>
    %116 = arith.mulf %113, %115 : vector<32x128xf32>
    %117 = arith.addf %112, %116 : vector<32x128xf32>
    %c32_i32 = arith.constant 32 : i32
    %118 = tpu.dynamic_rotate %109 by %c32_i32 dim 1 : vector<32x128xf32>, i32 -> vector<32x128xf32>
    %c11 = arith.constant 11 : index
    %c0_32 = arith.constant 0 : index
    %119 = vector.load %arg1[%c11, %c0_32] : memref<32x128xf32, #tpu.memory_space<vmem>>, vector<1x128xf32>
    %120 = vector.broadcast %119 : vector<1x128xf32> to vector<32x128xf32>
    %121 = arith.mulf %118, %120 : vector<32x128xf32>
    %122 = arith.addf %117, %121 : vector<32x128xf32>
    %c48_i32 = arith.constant 48 : i32
    %123 = tpu.dynamic_rotate %109 by %c48_i32 dim 1 : vector<32x128xf32>, i32 -> vector<32x128xf32>
    %c12 = arith.constant 12 : index
    %c0_33 = arith.constant 0 : index
    %124 = vector.load %arg1[%c12, %c0_33] : memref<32x128xf32, #tpu.memory_space<vmem>>, vector<1x128xf32>
    %125 = vector.broadcast %124 : vector<1x128xf32> to vector<32x128xf32>
    %126 = arith.mulf %123, %125 : vector<32x128xf32>
    %127 = arith.addf %122, %126 : vector<32x128xf32>
    %c2 = arith.constant 2 : index
    %c0_34 = arith.constant 0 : index
    %128 = vector.load %arg1[%c2, %c0_34] : memref<32x128xf32, #tpu.memory_space<vmem>>, vector<1x128xf32>
    %129 = vector.broadcast %128 : vector<1x128xf32> to vector<32x128xf32>
    %130 = arith.addf %127, %129 : vector<32x128xf32>
    %c3 = arith.constant 3 : index
    %c0_35 = arith.constant 0 : index
    %131 = vector.load %arg1[%c3, %c0_35] : memref<32x128xf32, #tpu.memory_space<vmem>>, vector<1x128xf32>
    %c4 = arith.constant 4 : index
    %c0_36 = arith.constant 0 : index
    %132 = vector.load %arg1[%c4, %c0_36] : memref<32x128xf32, #tpu.memory_space<vmem>>, vector<1x128xf32>
    %cst_37 = arith.constant dense<0.000000e+00> : vector<128xf32>
    %133 = vector.multi_reduction <add>, %130, %cst_37 [0] : vector<32x128xf32> to vector<128xf32>
    %134 = vector.shape_cast %133 : vector<128xf32> to vector<1x128xf32>
    %135 = arith.mulf %130, %130 : vector<32x128xf32>
    %cst_38 = arith.constant dense<0.000000e+00> : vector<128xf32>
    %136 = vector.multi_reduction <add>, %135, %cst_38 [0] : vector<32x128xf32> to vector<128xf32>
    %137 = vector.shape_cast %136 : vector<128xf32> to vector<1x128xf32>
    %138 = tpu.concatenate %134, %137 in 0 : vector<1x128xf32>, vector<1x128xf32> -> vector<2x128xf32>
    %c120_i32_39 = arith.constant 120 : i32
    %139 = tpu.dynamic_rotate %138 by %c120_i32_39 dim 1 : vector<2x128xf32>, i32 -> vector<2x128xf32>
    %c8_i32_40 = arith.constant 8 : i32
    %140 = tpu.dynamic_rotate %138 by %c8_i32_40 dim 1 : vector<2x128xf32>, i32 -> vector<2x128xf32>
    %141 = vector.shape_cast %7 : vector<1x128xi1> to vector<1x128xi1>
    %142 = vector.broadcast %141 : vector<1x128xi1> to vector<2x128xi1>
    %143 = arith.select %142, %139, %140 : vector<2x128xi1>, vector<2x128xf32>
    %144 = arith.addf %138, %143 : vector<2x128xf32>
    %c124_i32_41 = arith.constant 124 : i32
    %145 = tpu.dynamic_rotate %144 by %c124_i32_41 dim 1 : vector<2x128xf32>, i32 -> vector<2x128xf32>
    %c12_i32_42 = arith.constant 12 : i32
    %146 = tpu.dynamic_rotate %144 by %c12_i32_42 dim 1 : vector<2x128xf32>, i32 -> vector<2x128xf32>
    %147 = vector.shape_cast %9 : vector<1x128xi1> to vector<1x128xi1>
    %148 = vector.broadcast %147 : vector<1x128xi1> to vector<2x128xi1>
    %149 = arith.select %148, %145, %146 : vector<2x128xi1>, vector<2x128xf32>
    %150 = arith.addf %144, %149 : vector<2x128xf32>
    %c126_i32_43 = arith.constant 126 : i32
    %151 = tpu.dynamic_rotate %150 by %c126_i32_43 dim 1 : vector<2x128xf32>, i32 -> vector<2x128xf32>
    %c14_i32_44 = arith.constant 14 : i32
    %152 = tpu.dynamic_rotate %150 by %c14_i32_44 dim 1 : vector<2x128xf32>, i32 -> vector<2x128xf32>
    %153 = vector.shape_cast %11 : vector<1x128xi1> to vector<1x128xi1>
    %154 = vector.broadcast %153 : vector<1x128xi1> to vector<2x128xi1>
    %155 = arith.select %154, %151, %152 : vector<2x128xi1>, vector<2x128xf32>
    %156 = arith.addf %150, %155 : vector<2x128xf32>
    %c127_i32_45 = arith.constant 127 : i32
    %157 = tpu.dynamic_rotate %156 by %c127_i32_45 dim 1 : vector<2x128xf32>, i32 -> vector<2x128xf32>
    %c15_i32_46 = arith.constant 15 : i32
    %158 = tpu.dynamic_rotate %156 by %c15_i32_46 dim 1 : vector<2x128xf32>, i32 -> vector<2x128xf32>
    %159 = vector.shape_cast %13 : vector<1x128xi1> to vector<1x128xi1>
    %160 = vector.broadcast %159 : vector<1x128xi1> to vector<2x128xi1>
    %161 = arith.select %160, %157, %158 : vector<2x128xi1>, vector<2x128xf32>
    %162 = arith.addf %156, %161 : vector<2x128xf32>
    %cst_47 = arith.constant 0.001953125 : f32
    %163 = vector.broadcast %cst_47 : f32 to vector<2x128xf32>
    %164 = arith.mulf %162, %163 : vector<2x128xf32>
    %165 = vector.extract_strided_slice %164 {offsets = [0, 0], sizes = [1, 128], strides = [1, 1]} : vector<2x128xf32> to vector<1x128xf32>
    %166 = vector.extract_strided_slice %164 {offsets = [1, 0], sizes = [1, 128], strides = [1, 1]} : vector<2x128xf32> to vector<1x128xf32>
    %167 = arith.mulf %165, %165 : vector<1x128xf32>
    %168 = arith.subf %166, %167 : vector<1x128xf32>
    %cst_48 = arith.constant 9.99999974E-6 : f32
    %169 = vector.broadcast %cst_48 : f32 to vector<1x128xf32>
    %170 = arith.addf %168, %169 : vector<1x128xf32>
    %171 = math.rsqrt %170 : vector<1x128xf32>
    %172 = arith.mulf %131, %171 : vector<1x128xf32>
    %173 = arith.mulf %165, %172 : vector<1x128xf32>
    %174 = arith.subf %132, %173 : vector<1x128xf32>
    %175 = vector.broadcast %172 : vector<1x128xf32> to vector<32x128xf32>
    %176 = arith.mulf %130, %175 : vector<32x128xf32>
    %177 = vector.broadcast %174 : vector<1x128xf32> to vector<32x128xf32>
    %178 = arith.addf %176, %177 : vector<32x128xf32>
    %cst_49 = arith.constant 5.000000e-01 : f32
    %179 = vector.broadcast %cst_49 : f32 to vector<32x128xf32>
    %180 = arith.mulf %179, %178 : vector<32x128xf32>
    %cst_50 = arith.constant 0.707106769 : f32
    %181 = vector.broadcast %cst_50 : f32 to vector<32x128xf32>
    %182 = arith.mulf %178, %181 : vector<32x128xf32>
    %183 = math.absf %182 : vector<32x128xf32>
    %cst_51 = arith.constant 0.327591091 : f32
    %184 = vector.broadcast %cst_51 : f32 to vector<32x128xf32>
    %185 = arith.mulf %184, %183 : vector<32x128xf32>
    %cst_52 = arith.constant 1.000000e+00 : f32
    %186 = vector.broadcast %cst_52 : f32 to vector<32x128xf32>
    %187 = arith.addf %186, %185 : vector<32x128xf32>
    %188 = tpu.reciprocal %187 {approx = true} : vector<32x128xf32> -> vector<32x128xf32>
    %cst_53 = arith.constant 1.06140542 : f32
    %189 = vector.broadcast %cst_53 : f32 to vector<32x128xf32>
    %190 = arith.mulf %188, %189 : vector<32x128xf32>
    %cst_54 = arith.constant -1.45315206 : f32
    %191 = vector.broadcast %cst_54 : f32 to vector<32x128xf32>
    %192 = arith.addf %191, %190 : vector<32x128xf32>
    %193 = arith.mulf %188, %192 : vector<32x128xf32>
    %cst_55 = arith.constant 1.42141378 : f32
    %194 = vector.broadcast %cst_55 : f32 to vector<32x128xf32>
    %195 = arith.addf %194, %193 : vector<32x128xf32>
    %196 = arith.mulf %188, %195 : vector<32x128xf32>
    %cst_56 = arith.constant -0.284496725 : f32
    %197 = vector.broadcast %cst_56 : f32 to vector<32x128xf32>
    %198 = arith.addf %197, %196 : vector<32x128xf32>
    %199 = arith.mulf %188, %198 : vector<32x128xf32>
    %cst_57 = arith.constant 0.254829586 : f32
    %200 = vector.broadcast %cst_57 : f32 to vector<32x128xf32>
    %201 = arith.addf %200, %199 : vector<32x128xf32>
    %202 = arith.mulf %188, %201 : vector<32x128xf32>
    %cst_58 = arith.constant 0.000000e+00 : f32
    %203 = vector.broadcast %cst_58 : f32 to vector<32x128xf32>
    %204 = arith.subf %203, %183 : vector<32x128xf32>
    %205 = arith.mulf %204, %183 : vector<32x128xf32>
    %206 = math.exp %205 : vector<32x128xf32>
    %207 = arith.mulf %202, %206 : vector<32x128xf32>
    %cst_59 = arith.constant 1.000000e+00 : f32
    %208 = vector.broadcast %cst_59 : f32 to vector<32x128xf32>
    %209 = arith.subf %208, %207 : vector<32x128xf32>
    %cst_60 = arith.constant 0.000000e+00 : f32
    %210 = vector.broadcast %cst_60 : f32 to vector<32x128xf32>
    %211 = arith.cmpf olt, %182, %210 : vector<32x128xf32>
    %cst_61 = arith.constant 0.000000e+00 : f32
    %212 = vector.broadcast %cst_61 : f32 to vector<32x128xf32>
    %213 = arith.subf %212, %209 : vector<32x128xf32>
    %214 = arith.select %211, %213, %209 : vector<32x128xi1>, vector<32x128xf32>
    %cst_62 = arith.constant 1.000000e+00 : f32
    %215 = vector.broadcast %cst_62 : f32 to vector<32x128xf32>
    %216 = arith.addf %215, %214 : vector<32x128xf32>
    %217 = arith.mulf %180, %216 : vector<32x128xf32>
    %c1_i32_63 = arith.constant 1 : i32
    %218 = tpu.dynamic_rotate %217 by %c1_i32_63 dim 0 : vector<32x128xf32>, i32 -> vector<32x128xf32>
    %cst_64 = arith.constant 0.000000e+00 : f32
    %219 = vector.broadcast %cst_64 : f32 to vector<32x128xf32>
    %220 = arith.select %21, %218, %219 : vector<32x128xi1>, vector<32x128xf32>
    %c1_i32_65 = arith.constant 1 : i32
    %221 = tpu.dynamic_rotate %220 by %c1_i32_65 dim 1 : vector<32x128xf32>, i32 -> vector<32x128xf32>
    %cst_66 = arith.constant 0.000000e+00 : f32
    %222 = vector.shape_cast %17 : vector<1x128xi1> to vector<1x128xi1>
    %223 = vector.broadcast %222 : vector<1x128xi1> to vector<32x128xi1>
    %224 = vector.broadcast %cst_66 : f32 to vector<32x128xf32>
    %225 = arith.select %223, %221, %224 : vector<32x128xi1>, vector<32x128xf32>
    %c13 = arith.constant 13 : index
    %c0_67 = arith.constant 0 : index
    %226 = vector.load %arg1[%c13, %c0_67] : memref<32x128xf32, #tpu.memory_space<vmem>>, vector<1x128xf32>
    %227 = vector.broadcast %226 : vector<1x128xf32> to vector<32x128xf32>
    %228 = arith.mulf %225, %227 : vector<32x128xf32>
    %c14 = arith.constant 14 : index
    %c0_68 = arith.constant 0 : index
    %229 = vector.load %arg1[%c14, %c0_68] : memref<32x128xf32, #tpu.memory_space<vmem>>, vector<1x128xf32>
    %230 = vector.broadcast %229 : vector<1x128xf32> to vector<32x128xf32>
    %231 = arith.mulf %220, %230 : vector<32x128xf32>
    %232 = arith.addf %228, %231 : vector<32x128xf32>
    %c127_i32_69 = arith.constant 127 : i32
    %233 = tpu.dynamic_rotate %220 by %c127_i32_69 dim 1 : vector<32x128xf32>, i32 -> vector<32x128xf32>
    %cst_70 = arith.constant 0.000000e+00 : f32
    %234 = vector.shape_cast %15 : vector<1x128xi1> to vector<1x128xi1>
    %235 = vector.broadcast %234 : vector<1x128xi1> to vector<32x128xi1>
    %236 = vector.broadcast %cst_70 : f32 to vector<32x128xf32>
    %237 = arith.select %235, %233, %236 : vector<32x128xi1>, vector<32x128xf32>
    %c15 = arith.constant 15 : index
    %c0_71 = arith.constant 0 : index
    %238 = vector.load %arg1[%c15, %c0_71] : memref<32x128xf32, #tpu.memory_space<vmem>>, vector<1x128xf32>
    %239 = vector.broadcast %238 : vector<1x128xf32> to vector<32x128xf32>
    %240 = arith.mulf %237, %239 : vector<32x128xf32>
    %241 = arith.addf %232, %240 : vector<32x128xf32>
    %c1_i32_72 = arith.constant 1 : i32
    %242 = tpu.dynamic_rotate %217 by %c1_i32_72 dim 1 : vector<32x128xf32>, i32 -> vector<32x128xf32>
    %cst_73 = arith.constant 0.000000e+00 : f32
    %243 = vector.shape_cast %17 : vector<1x128xi1> to vector<1x128xi1>
    %244 = vector.broadcast %243 : vector<1x128xi1> to vector<32x128xi1>
    %245 = vector.broadcast %cst_73 : f32 to vector<32x128xf32>
    %246 = arith.select %244, %242, %245 : vector<32x128xi1>, vector<32x128xf32>
    %c16 = arith.constant 16 : index
    %c0_74 = arith.constant 0 : index
    %247 = vector.load %arg1[%c16, %c0_74] : memref<32x128xf32, #tpu.memory_space<vmem>>, vector<1x128xf32>
    %248 = vector.broadcast %247 : vector<1x128xf32> to vector<32x128xf32>
    %249 = arith.mulf %246, %248 : vector<32x128xf32>
    %250 = arith.addf %241, %249 : vector<32x128xf32>
    %c17 = arith.constant 17 : index
    %c0_75 = arith.constant 0 : index
    %251 = vector.load %arg1[%c17, %c0_75] : memref<32x128xf32, #tpu.memory_space<vmem>>, vector<1x128xf32>
    %252 = vector.broadcast %251 : vector<1x128xf32> to vector<32x128xf32>
    %253 = arith.mulf %217, %252 : vector<32x128xf32>
    %254 = arith.addf %250, %253 : vector<32x128xf32>
    %c127_i32_76 = arith.constant 127 : i32
    %255 = tpu.dynamic_rotate %217 by %c127_i32_76 dim 1 : vector<32x128xf32>, i32 -> vector<32x128xf32>
    %cst_77 = arith.constant 0.000000e+00 : f32
    %256 = vector.shape_cast %15 : vector<1x128xi1> to vector<1x128xi1>
    %257 = vector.broadcast %256 : vector<1x128xi1> to vector<32x128xi1>
    %258 = vector.broadcast %cst_77 : f32 to vector<32x128xf32>
    %259 = arith.select %257, %255, %258 : vector<32x128xi1>, vector<32x128xf32>
    %c18 = arith.constant 18 : index
    %c0_78 = arith.constant 0 : index
    %260 = vector.load %arg1[%c18, %c0_78] : memref<32x128xf32, #tpu.memory_space<vmem>>, vector<1x128xf32>
    %261 = vector.broadcast %260 : vector<1x128xf32> to vector<32x128xf32>
    %262 = arith.mulf %259, %261 : vector<32x128xf32>
    %263 = arith.addf %254, %262 : vector<32x128xf32>
    %c31_i32 = arith.constant 31 : i32
    %264 = tpu.dynamic_rotate %217 by %c31_i32 dim 0 : vector<32x128xf32>, i32 -> vector<32x128xf32>
    %cst_79 = arith.constant 0.000000e+00 : f32
    %265 = vector.broadcast %cst_79 : f32 to vector<32x128xf32>
    %266 = arith.select %19, %264, %265 : vector<32x128xi1>, vector<32x128xf32>
    %c1_i32_80 = arith.constant 1 : i32
    %267 = tpu.dynamic_rotate %266 by %c1_i32_80 dim 1 : vector<32x128xf32>, i32 -> vector<32x128xf32>
    %cst_81 = arith.constant 0.000000e+00 : f32
    %268 = vector.shape_cast %17 : vector<1x128xi1> to vector<1x128xi1>
    %269 = vector.broadcast %268 : vector<1x128xi1> to vector<32x128xi1>
    %270 = vector.broadcast %cst_81 : f32 to vector<32x128xf32>
    %271 = arith.select %269, %267, %270 : vector<32x128xi1>, vector<32x128xf32>
    %c19 = arith.constant 19 : index
    %c0_82 = arith.constant 0 : index
    %272 = vector.load %arg1[%c19, %c0_82] : memref<32x128xf32, #tpu.memory_space<vmem>>, vector<1x128xf32>
    %273 = vector.broadcast %272 : vector<1x128xf32> to vector<32x128xf32>
    %274 = arith.mulf %271, %273 : vector<32x128xf32>
    %275 = arith.addf %263, %274 : vector<32x128xf32>
    %c20 = arith.constant 20 : index
    %c0_83 = arith.constant 0 : index
    %276 = vector.load %arg1[%c20, %c0_83] : memref<32x128xf32, #tpu.memory_space<vmem>>, vector<1x128xf32>
    %277 = vector.broadcast %276 : vector<1x128xf32> to vector<32x128xf32>
    %278 = arith.mulf %266, %277 : vector<32x128xf32>
    %279 = arith.addf %275, %278 : vector<32x128xf32>
    %c127_i32_84 = arith.constant 127 : i32
    %280 = tpu.dynamic_rotate %266 by %c127_i32_84 dim 1 : vector<32x128xf32>, i32 -> vector<32x128xf32>
    %cst_85 = arith.constant 0.000000e+00 : f32
    %281 = vector.shape_cast %15 : vector<1x128xi1> to vector<1x128xi1>
    %282 = vector.broadcast %281 : vector<1x128xi1> to vector<32x128xi1>
    %283 = vector.broadcast %cst_85 : f32 to vector<32x128xf32>
    %284 = arith.select %282, %280, %283 : vector<32x128xi1>, vector<32x128xf32>
    %c21 = arith.constant 21 : index
    %c0_86 = arith.constant 0 : index
    %285 = vector.load %arg1[%c21, %c0_86] : memref<32x128xf32, #tpu.memory_space<vmem>>, vector<1x128xf32>
    %286 = vector.broadcast %285 : vector<1x128xf32> to vector<32x128xf32>
    %287 = arith.mulf %284, %286 : vector<32x128xf32>
    %288 = arith.addf %279, %287 : vector<32x128xf32>
    %c5 = arith.constant 5 : index
    %c0_87 = arith.constant 0 : index
    %289 = vector.load %arg1[%c5, %c0_87] : memref<32x128xf32, #tpu.memory_space<vmem>>, vector<1x128xf32>
    %290 = vector.broadcast %289 : vector<1x128xf32> to vector<32x128xf32>
    %291 = arith.addf %288, %290 : vector<32x128xf32>
    %c6 = arith.constant 6 : index
    %c0_88 = arith.constant 0 : index
    %292 = vector.load %arg1[%c6, %c0_88] : memref<32x128xf32, #tpu.memory_space<vmem>>, vector<1x128xf32>
    %c7 = arith.constant 7 : index
    %c0_89 = arith.constant 0 : index
    %293 = vector.load %arg1[%c7, %c0_89] : memref<32x128xf32, #tpu.memory_space<vmem>>, vector<1x128xf32>
    %cst_90 = arith.constant dense<0.000000e+00> : vector<128xf32>
    %294 = vector.multi_reduction <add>, %291, %cst_90 [0] : vector<32x128xf32> to vector<128xf32>
    %295 = vector.shape_cast %294 : vector<128xf32> to vector<1x128xf32>
    %296 = arith.mulf %291, %291 : vector<32x128xf32>
    %cst_91 = arith.constant dense<0.000000e+00> : vector<128xf32>
    %297 = vector.multi_reduction <add>, %296, %cst_91 [0] : vector<32x128xf32> to vector<128xf32>
    %298 = vector.shape_cast %297 : vector<128xf32> to vector<1x128xf32>
    %299 = tpu.concatenate %295, %298 in 0 : vector<1x128xf32>, vector<1x128xf32> -> vector<2x128xf32>
    %c120_i32_92 = arith.constant 120 : i32
    %300 = tpu.dynamic_rotate %299 by %c120_i32_92 dim 1 : vector<2x128xf32>, i32 -> vector<2x128xf32>
    %c8_i32_93 = arith.constant 8 : i32
    %301 = tpu.dynamic_rotate %299 by %c8_i32_93 dim 1 : vector<2x128xf32>, i32 -> vector<2x128xf32>
    %302 = vector.shape_cast %7 : vector<1x128xi1> to vector<1x128xi1>
    %303 = vector.broadcast %302 : vector<1x128xi1> to vector<2x128xi1>
    %304 = arith.select %303, %300, %301 : vector<2x128xi1>, vector<2x128xf32>
    %305 = arith.addf %299, %304 : vector<2x128xf32>
    %c124_i32_94 = arith.constant 124 : i32
    %306 = tpu.dynamic_rotate %305 by %c124_i32_94 dim 1 : vector<2x128xf32>, i32 -> vector<2x128xf32>
    %c12_i32_95 = arith.constant 12 : i32
    %307 = tpu.dynamic_rotate %305 by %c12_i32_95 dim 1 : vector<2x128xf32>, i32 -> vector<2x128xf32>
    %308 = vector.shape_cast %9 : vector<1x128xi1> to vector<1x128xi1>
    %309 = vector.broadcast %308 : vector<1x128xi1> to vector<2x128xi1>
    %310 = arith.select %309, %306, %307 : vector<2x128xi1>, vector<2x128xf32>
    %311 = arith.addf %305, %310 : vector<2x128xf32>
    %c126_i32_96 = arith.constant 126 : i32
    %312 = tpu.dynamic_rotate %311 by %c126_i32_96 dim 1 : vector<2x128xf32>, i32 -> vector<2x128xf32>
    %c14_i32_97 = arith.constant 14 : i32
    %313 = tpu.dynamic_rotate %311 by %c14_i32_97 dim 1 : vector<2x128xf32>, i32 -> vector<2x128xf32>
    %314 = vector.shape_cast %11 : vector<1x128xi1> to vector<1x128xi1>
    %315 = vector.broadcast %314 : vector<1x128xi1> to vector<2x128xi1>
    %316 = arith.select %315, %312, %313 : vector<2x128xi1>, vector<2x128xf32>
    %317 = arith.addf %311, %316 : vector<2x128xf32>
    %c127_i32_98 = arith.constant 127 : i32
    %318 = tpu.dynamic_rotate %317 by %c127_i32_98 dim 1 : vector<2x128xf32>, i32 -> vector<2x128xf32>
    %c15_i32_99 = arith.constant 15 : i32
    %319 = tpu.dynamic_rotate %317 by %c15_i32_99 dim 1 : vector<2x128xf32>, i32 -> vector<2x128xf32>
    %320 = vector.shape_cast %13 : vector<1x128xi1> to vector<1x128xi1>
    %321 = vector.broadcast %320 : vector<1x128xi1> to vector<2x128xi1>
    %322 = arith.select %321, %318, %319 : vector<2x128xi1>, vector<2x128xf32>
    %323 = arith.addf %317, %322 : vector<2x128xf32>
    %cst_100 = arith.constant 0.001953125 : f32
    %324 = vector.broadcast %cst_100 : f32 to vector<2x128xf32>
    %325 = arith.mulf %323, %324 : vector<2x128xf32>
    %326 = vector.extract_strided_slice %325 {offsets = [0, 0], sizes = [1, 128], strides = [1, 1]} : vector<2x128xf32> to vector<1x128xf32>
    %327 = vector.extract_strided_slice %325 {offsets = [1, 0], sizes = [1, 128], strides = [1, 1]} : vector<2x128xf32> to vector<1x128xf32>
    %328 = arith.mulf %326, %326 : vector<1x128xf32>
    %329 = arith.subf %327, %328 : vector<1x128xf32>
    %cst_101 = arith.constant 9.99999974E-6 : f32
    %330 = vector.broadcast %cst_101 : f32 to vector<1x128xf32>
    %331 = arith.addf %329, %330 : vector<1x128xf32>
    %332 = math.rsqrt %331 : vector<1x128xf32>
    %333 = arith.mulf %292, %332 : vector<1x128xf32>
    %334 = arith.mulf %326, %333 : vector<1x128xf32>
    %335 = arith.subf %293, %334 : vector<1x128xf32>
    %336 = vector.broadcast %333 : vector<1x128xf32> to vector<32x128xf32>
    %337 = arith.mulf %291, %336 : vector<32x128xf32>
    %338 = vector.broadcast %335 : vector<1x128xf32> to vector<32x128xf32>
    %339 = arith.addf %337, %338 : vector<32x128xf32>
    %cst_102 = arith.constant 5.000000e-01 : f32
    %340 = vector.broadcast %cst_102 : f32 to vector<32x128xf32>
    %341 = arith.mulf %340, %339 : vector<32x128xf32>
    %cst_103 = arith.constant 0.707106769 : f32
    %342 = vector.broadcast %cst_103 : f32 to vector<32x128xf32>
    %343 = arith.mulf %339, %342 : vector<32x128xf32>
    %344 = math.absf %343 : vector<32x128xf32>
    %cst_104 = arith.constant 0.327591091 : f32
    %345 = vector.broadcast %cst_104 : f32 to vector<32x128xf32>
    %346 = arith.mulf %345, %344 : vector<32x128xf32>
    %cst_105 = arith.constant 1.000000e+00 : f32
    %347 = vector.broadcast %cst_105 : f32 to vector<32x128xf32>
    %348 = arith.addf %347, %346 : vector<32x128xf32>
    %349 = tpu.reciprocal %348 {approx = true} : vector<32x128xf32> -> vector<32x128xf32>
    %cst_106 = arith.constant 1.06140542 : f32
    %350 = vector.broadcast %cst_106 : f32 to vector<32x128xf32>
    %351 = arith.mulf %349, %350 : vector<32x128xf32>
    %cst_107 = arith.constant -1.45315206 : f32
    %352 = vector.broadcast %cst_107 : f32 to vector<32x128xf32>
    %353 = arith.addf %352, %351 : vector<32x128xf32>
    %354 = arith.mulf %349, %353 : vector<32x128xf32>
    %cst_108 = arith.constant 1.42141378 : f32
    %355 = vector.broadcast %cst_108 : f32 to vector<32x128xf32>
    %356 = arith.addf %355, %354 : vector<32x128xf32>
    %357 = arith.mulf %349, %356 : vector<32x128xf32>
    %cst_109 = arith.constant -0.284496725 : f32
    %358 = vector.broadcast %cst_109 : f32 to vector<32x128xf32>
    %359 = arith.addf %358, %357 : vector<32x128xf32>
    %360 = arith.mulf %349, %359 : vector<32x128xf32>
    %cst_110 = arith.constant 0.254829586 : f32
    %361 = vector.broadcast %cst_110 : f32 to vector<32x128xf32>
    %362 = arith.addf %361, %360 : vector<32x128xf32>
    %363 = arith.mulf %349, %362 : vector<32x128xf32>
    %cst_111 = arith.constant 0.000000e+00 : f32
    %364 = vector.broadcast %cst_111 : f32 to vector<32x128xf32>
    %365 = arith.subf %364, %344 : vector<32x128xf32>
    %366 = arith.mulf %365, %344 : vector<32x128xf32>
    %367 = math.exp %366 : vector<32x128xf32>
    %368 = arith.mulf %363, %367 : vector<32x128xf32>
    %cst_112 = arith.constant 1.000000e+00 : f32
    %369 = vector.broadcast %cst_112 : f32 to vector<32x128xf32>
    %370 = arith.subf %369, %368 : vector<32x128xf32>
    %cst_113 = arith.constant 0.000000e+00 : f32
    %371 = vector.broadcast %cst_113 : f32 to vector<32x128xf32>
    %372 = arith.cmpf olt, %343, %371 : vector<32x128xf32>
    %cst_114 = arith.constant 0.000000e+00 : f32
    %373 = vector.broadcast %cst_114 : f32 to vector<32x128xf32>
    %374 = arith.subf %373, %370 : vector<32x128xf32>
    %375 = arith.select %372, %374, %370 : vector<32x128xi1>, vector<32x128xf32>
    %cst_115 = arith.constant 1.000000e+00 : f32
    %376 = vector.broadcast %cst_115 : f32 to vector<32x128xf32>
    %377 = arith.addf %376, %375 : vector<32x128xf32>
    %378 = arith.mulf %341, %377 : vector<32x128xf32>
    %c22 = arith.constant 22 : index
    %c0_116 = arith.constant 0 : index
    %379 = vector.load %arg1[%c22, %c0_116] : memref<32x128xf32, #tpu.memory_space<vmem>>, vector<1x128xf32>
    %380 = vector.broadcast %379 : vector<1x128xf32> to vector<32x128xf32>
    %381 = arith.mulf %378, %380 : vector<32x128xf32>
    %c16_i32_117 = arith.constant 16 : i32
    %382 = tpu.dynamic_rotate %378 by %c16_i32_117 dim 1 : vector<32x128xf32>, i32 -> vector<32x128xf32>
    %c23 = arith.constant 23 : index
    %c0_118 = arith.constant 0 : index
    %383 = vector.load %arg1[%c23, %c0_118] : memref<32x128xf32, #tpu.memory_space<vmem>>, vector<1x128xf32>
    %384 = vector.broadcast %383 : vector<1x128xf32> to vector<32x128xf32>
    %385 = arith.mulf %382, %384 : vector<32x128xf32>
    %386 = arith.addf %381, %385 : vector<32x128xf32>
    %c32_i32_119 = arith.constant 32 : i32
    %387 = tpu.dynamic_rotate %378 by %c32_i32_119 dim 1 : vector<32x128xf32>, i32 -> vector<32x128xf32>
    %c24 = arith.constant 24 : index
    %c0_120 = arith.constant 0 : index
    %388 = vector.load %arg1[%c24, %c0_120] : memref<32x128xf32, #tpu.memory_space<vmem>>, vector<1x128xf32>
    %389 = vector.broadcast %388 : vector<1x128xf32> to vector<32x128xf32>
    %390 = arith.mulf %387, %389 : vector<32x128xf32>
    %391 = arith.addf %386, %390 : vector<32x128xf32>
    %c48_i32_121 = arith.constant 48 : i32
    %392 = tpu.dynamic_rotate %378 by %c48_i32_121 dim 1 : vector<32x128xf32>, i32 -> vector<32x128xf32>
    %c25 = arith.constant 25 : index
    %c0_122 = arith.constant 0 : index
    %393 = vector.load %arg1[%c25, %c0_122] : memref<32x128xf32, #tpu.memory_space<vmem>>, vector<1x128xf32>
    %394 = vector.broadcast %393 : vector<1x128xf32> to vector<32x128xf32>
    %395 = arith.mulf %392, %394 : vector<32x128xf32>
    %396 = arith.addf %391, %395 : vector<32x128xf32>
    %c64_i32 = arith.constant 64 : i32
    %397 = tpu.dynamic_rotate %378 by %c64_i32 dim 1 : vector<32x128xf32>, i32 -> vector<32x128xf32>
    %c26 = arith.constant 26 : index
    %c0_123 = arith.constant 0 : index
    %398 = vector.load %arg1[%c26, %c0_123] : memref<32x128xf32, #tpu.memory_space<vmem>>, vector<1x128xf32>
    %399 = vector.broadcast %398 : vector<1x128xf32> to vector<32x128xf32>
    %400 = arith.mulf %397, %399 : vector<32x128xf32>
    %401 = arith.addf %396, %400 : vector<32x128xf32>
    %c80_i32 = arith.constant 80 : i32
    %402 = tpu.dynamic_rotate %378 by %c80_i32 dim 1 : vector<32x128xf32>, i32 -> vector<32x128xf32>
    %c27 = arith.constant 27 : index
    %c0_124 = arith.constant 0 : index
    %403 = vector.load %arg1[%c27, %c0_124] : memref<32x128xf32, #tpu.memory_space<vmem>>, vector<1x128xf32>
    %404 = vector.broadcast %403 : vector<1x128xf32> to vector<32x128xf32>
    %405 = arith.mulf %402, %404 : vector<32x128xf32>
    %406 = arith.addf %401, %405 : vector<32x128xf32>
    %c96_i32 = arith.constant 96 : i32
    %407 = tpu.dynamic_rotate %378 by %c96_i32 dim 1 : vector<32x128xf32>, i32 -> vector<32x128xf32>
    %c28 = arith.constant 28 : index
    %c0_125 = arith.constant 0 : index
    %408 = vector.load %arg1[%c28, %c0_125] : memref<32x128xf32, #tpu.memory_space<vmem>>, vector<1x128xf32>
    %409 = vector.broadcast %408 : vector<1x128xf32> to vector<32x128xf32>
    %410 = arith.mulf %407, %409 : vector<32x128xf32>
    %411 = arith.addf %406, %410 : vector<32x128xf32>
    %c112_i32 = arith.constant 112 : i32
    %412 = tpu.dynamic_rotate %378 by %c112_i32 dim 1 : vector<32x128xf32>, i32 -> vector<32x128xf32>
    %c29 = arith.constant 29 : index
    %c0_126 = arith.constant 0 : index
    %413 = vector.load %arg1[%c29, %c0_126] : memref<32x128xf32, #tpu.memory_space<vmem>>, vector<1x128xf32>
    %414 = vector.broadcast %413 : vector<1x128xf32> to vector<32x128xf32>
    %415 = arith.mulf %412, %414 : vector<32x128xf32>
    %416 = arith.addf %411, %415 : vector<32x128xf32>
    %c8 = arith.constant 8 : index
    %c0_127 = arith.constant 0 : index
    %417 = vector.load %arg1[%c8, %c0_127] : memref<32x128xf32, #tpu.memory_space<vmem>>, vector<1x128xf32>
    %418 = vector.broadcast %417 : vector<1x128xf32> to vector<32x128xf32>
    %419 = arith.addf %416, %418 : vector<32x128xf32>
    %420 = arith.addf %419, %22 : vector<32x128xf32>
    %c0_128 = arith.constant 0 : index
    %c0_129 = arith.constant 0 : index
    %421 = vector.load %arg2[%c0_128, %c0_129] : memref<32x128xf32, #tpu.memory_space<vmem>>, vector<32x128xf32>
    tpu.vector_store %arg2[%c0_128, %c0_129], %420 {strides = array<i32>} : memref<32x128xf32, #tpu.memory_space<vmem>>, vector<32x128xf32>,
    return
  }
}

</mosaic_0001>

<bundles_post_ra>
// kernel: tile.7
= control target key start
LH: loop header
LB: loop body
LE: loop exit
PB: predicated region body
PF: predicated region fallthrough
CT: control target
= control target key end

     0   :  { %vm132_vm0 = vcmask 1047556   ;;  %s244_s15 = smov 64   ;;  %vm134_vm1 = vcmask 523264   ;;  %vm171_vm2 = vcmask 1048064   ;;  %s387_s0 = inlined_call_operand.vmem [shape: f32[32,2,64], index: 0, kind: input, shape index: {}]   ;;  %s388_s1 = inlined_call_operand.vmem [shape: f32[32,128], index: 1, kind: output, shape index: {}]  }
   0x1   :  { %v230_v0 = vld [vmem:[%s387_s0 + $0xe] sm:$0x3]  ;;  %v231_v1 = vld [vmem:[%s387_s0 + $0xc] sm:$0x3]  ;;  %v232_v2 = vld [vmem:[%s387_s0 + $0xa] sm:$0x3] }
   0x2   :  { %103 = vst [vmem:[#allocation0 + $0x38] sm:$0x3] %v230_v0  ;;  %v233_v3 = vld [vmem:[%s387_s0 + $0x8] sm:$0x3]  ;;  %v234_v4 = vld [vmem:[%s387_s0 + $0x6] sm:$0x3] }
   0x3   :  { %107 = vst [vmem:[#allocation0 + $0x30] sm:$0x3] %v231_v1  ;;  %v235_v5 = vld [vmem:[%s387_s0 + $0x4] sm:$0x3]  ;;  %v236_v6 = vld [vmem:[%s387_s0 + $0x2] sm:$0x3] }
   0x4   :  { %111 = vst [vmem:[#allocation0 + $0x28] sm:$0x3] %v232_v2  ;;  %v128_v7 = vld [vmem:[%s387_s0] sm:$0x3]  ;;  %v214_v8 = vld [vmem:[%s387_s0 + $0x2e] sm:$0x3] }
   0x5   :  { %115 = vst [vmem:[#allocation0 + $0x20] sm:$0x3] %v233_v3  ;;  %v215_v9 = vld [vmem:[%s387_s0 + $0x2c] sm:$0x3]  ;;  %v216_v10 = vld [vmem:[%s387_s0 + $0x2a] sm:$0x3] }
   0x6   :  { %119 = vst [vmem:[#allocation0 + $0x18] sm:$0x3] %v234_v4  ;;  %v217_v11 = vld [vmem:[%s387_s0 + $0x28] sm:$0x3]  ;;  %v218_v12 = vld [vmem:[%s387_s0 + $0x26] sm:$0x3] }
   0x7   :  { %123 = vst [vmem:[#allocation0 + $0x10] sm:$0x3] %v235_v5  ;;  %v219_v13 = vld [vmem:[%s387_s0 + $0x24] sm:$0x3]  ;;  %v220_v14 = vld [vmem:[%s387_s0 + $0x22] sm:$0x3] }
   0x8   :  { %127 = vst [vmem:[#allocation0 + $0x8] sm:$0x3] %v236_v6  ;;  %v221_v15 = vld [vmem:[%s387_s0 + $0x20] sm:$0x3]  ;;  %v222_v17 = vld [vmem:[%s387_s0 + $0x1e] sm:$0x3] }
   0x9   :  { %129 = vst [vmem:[#allocation0] sm:$0x3] %v128_v7  ;;  %v223_v18 = vld [vmem:[%s387_s0 + $0x1c] sm:$0x3]  ;;  %v224_v21 = vld [vmem:[%s387_s0 + $0x1a] sm:$0x3] }
   0xa   :  { %39 = vst [vmem:[#allocation0 + $0xb8] sm:$0x3] %v214_v8  ;;  %v225_v22 = vld [vmem:[%s387_s0 + $0x18] sm:$0x3]  ;;  %v226_v23 = vld [vmem:[%s387_s0 + $0x16] sm:$0x3] }
   0xb   :  { %43 = vst [vmem:[#allocation0 + $0xb0] sm:$0x3] %v215_v9  ;;  %v227_v24 = vld [vmem:[%s387_s0 + $0x14] sm:$0x3]  ;;  %v228_v25 = vld [vmem:[%s387_s0 + $0x12] sm:$0x3] }
   0xc   :  { %47 = vst [vmem:[#allocation0 + $0xa8] sm:$0x3] %v216_v10  ;;  %v166_v16 = vld [vmem:[#allocation0 + $0x1] ss:$8 sm:$0xf0]  }
   0xd   :  { %51 = vst [vmem:[#allocation0 + $0xa0] sm:$0x3] %v217_v11  ;;  %v229_v26 = vld [vmem:[%s387_s0 + $0x10] sm:$0x3]  ;;  %v206_v28 = vld [vmem:[%s387_s0 + $0x3e] sm:$0x3] }
   0xe   :  { %55 = vst [vmem:[#allocation0 + $0x98] sm:$0x3] %v218_v12  ;;  %v207_v29 = vld [vmem:[%s387_s0 + $0x3c] sm:$0x3]  ;;  %v208_v32 = vld [vmem:[%s387_s0 + $0x3a] sm:$0x3] }
   0xf   :  { %59 = vst [vmem:[#allocation0 + $0x90] sm:$0x3] %v219_v13  ;;  %v209_v33 = vld [vmem:[%s387_s0 + $0x38] sm:$0x3]  ;;  %v210_v34 = vld [vmem:[%s387_s0 + $0x36] sm:$0x3] }
  0x10   :  { %v164_v19 = vld [vmem:[#allocation0 + $0x1] ss:$8 sm:$0xf]   ;;  %63 = vst [vmem:[#allocation0 + $0x88] sm:$0x3] %v220_v14 }
  0x11   :  { %v168_v20 = vsel %vm132_vm0, %v166_v16, %v164_v19  ;;  %67 = vst [vmem:[#allocation0 + $0x80] sm:$0x3] %v221_v15  ;;  %v211_v35 = vld [vmem:[%s387_s0 + $0x34] sm:$0x3]  ;;  %v212_v36 = vld [vmem:[%s387_s0 + $0x32] sm:$0x3] }
  0x12   :  { %169 = vrot.lane.b32.xlu0 %v168_v20, %s244_s15  ;;  %71 = vst [vmem:[#allocation0 + $0x78] sm:$0x3] %v222_v17  ;;  %v213_v37 = vld [vmem:[%s387_s0 + $0x30] sm:$0x3] }
  0x13   :  { %75 = vst [vmem:[#allocation0 + $0x70] sm:$0x3] %v223_v18  ;;  %v130_v44 = vld [vmem:[#allocation0] ss:$8 sm:$0xf]  }
  0x14   :  { %79 = vst [vmem:[#allocation0 + $0x68] sm:$0x3] %v224_v21  ;;  %v187_v27 = vld [vmem:[#allocation0 + $0x81] ss:$8 sm:$0xf0]  }
  0x15   :  { %83 = vst [vmem:[#allocation0 + $0x60] sm:$0x3] %v225_v22  ;;  %v131_v45 = vld [vmem:[#allocation0] ss:$8 sm:$0xf0]  }
  0x16   :  { %87 = vst [vmem:[#allocation0 + $0x58] sm:$0x3] %v226_v23  ;;  %v133_v46 = vsel %vm132_vm0, %v131_v45, %v130_v44  ;;  %v148_v48 = vld [vmem:[#allocation0 + $0x80] ss:$8 sm:$0xf0]  }
  0x17   :  { %91 = vst [vmem:[#allocation0 + $0x50] sm:$0x3] %v227_v24 }
  0x18   :  { %v185_v30 = vld [vmem:[#allocation0 + $0x81] ss:$8 sm:$0xf]   ;;  %95 = vst [vmem:[#allocation0 + $0x48] sm:$0x3] %v228_v25 }
  0x19   :  { %v189_v31 = vsel %vm132_vm0, %v187_v27, %v185_v30  ;;  %99 = vst [vmem:[#allocation0 + $0x40] sm:$0x3] %v229_v26  ;;  %v146_v47 = vld [vmem:[#allocation0 + $0x80] ss:$8 sm:$0xf]  }
  0x1a   :  { %190 = vrot.lane.b32.xlu1 %v189_v31, %s244_s15  ;;  %7 = vst [vmem:[#allocation0 + $0xf8] sm:$0x3] %v206_v28  ;;  %v150_v49 = vsel %vm132_vm0, %v148_v48, %v146_v47 }
  0x1b   :  { %11 = vst [vmem:[#allocation0 + $0xf0] sm:$0x3] %v207_v29 }
  0x1c   :  { %15 = vst [vmem:[#allocation0 + $0xe8] sm:$0x3] %v208_v32  ;;  %v176_v38 = vld [vmem:[#allocation0 + $0x41] ss:$8 sm:$0xf0]  }
  0x1d   :  { %19 = vst [vmem:[#allocation0 + $0xe0] sm:$0x3] %v209_v33  ;;  %v139_v51 = vld [vmem:[#allocation0 + $0x40] ss:$8 sm:$0xf0]  }
  0x1e   :  { %23 = vst [vmem:[#allocation0 + $0xd8] sm:$0x3] %v210_v34 }
  0x1f   :  { %27 = vst [vmem:[#allocation0 + $0xd0] sm:$0x3] %v211_v35 }
  0x20   :  { %v174_v39 = vld [vmem:[#allocation0 + $0x41] ss:$8 sm:$0xf]   ;;  %31 = vst [vmem:[#allocation0 + $0xc8] sm:$0x3] %v212_v36 }
  0x21   :  { %v178_v40 = vsel %vm132_vm0, %v176_v38, %v174_v39  ;;  %35 = vst [vmem:[#allocation0 + $0xc0] sm:$0x3] %v213_v37  ;;  %v137_v50 = vld [vmem:[#allocation0 + $0x40] ss:$8 sm:$0xf]  }
  0x22   :  { %179 = vrot.lane.b32.xlu0 %v178_v40, %s244_s15  ;;  %135 = vst.msk [vmem:[%s388_s1] sm:$0xff] %vm134_vm1, %v133_v46   ;;  %v141_v52 = vsel %vm132_vm0, %v139_v51, %v137_v50 }
  0x23   :  { %238 = vst.msk [vmem:[%s388_s1 + $0x10] sm:$0xff] %vm134_vm1, %v150_v49  }
  0x24   :  { %v198_v41 = vld [vmem:[#allocation0 + $0xc1] ss:$8 sm:$0xf0]   ;;  %237 = vst.msk [vmem:[%s388_s1 + $0x8] sm:$0xff] %vm134_vm1, %v141_v52  }
  0x25   :  { %v157_v54 = vld [vmem:[#allocation0 + $0xc0] ss:$8 sm:$0xf0]  }
  0x28   :  { %v196_v42 = vld [vmem:[#allocation0 + $0xc1] ss:$8 sm:$0xf]   ;;  %v155_v53 = vld [vmem:[#allocation0 + $0xc0] ss:$8 sm:$0xf]  }
  0x29   :  { %v200_v43 = vsel %vm132_vm0, %v198_v41, %v196_v42  ;;  %v159_v55 = vsel %vm132_vm0, %v157_v54, %v155_v53 }
  0x2a   :  { %201 = vrot.lane.b32.xlu1 %v200_v43, %s244_s15  ;;  %239 = vst.msk [vmem:[%s388_s1 + $0x18] sm:$0xff] %vm134_vm1, %v159_v55  }
  0x84   :  { %v170_v56 = vpop.permute.xlu0 %169  }
  0x85   :  { %172 = vst.msk [vmem:[%s388_s1] sm:$0xff] %vm171_vm2, %v170_v56  }
  0x8c   :  { %v191_v57 = vpop.permute.xlu1 %190  }
  0x8d   :  { %241 = vst.msk [vmem:[%s388_s1 + $0x10] sm:$0xff] %vm171_vm2, %v191_v57  }
  0x94   :  { %v180_v58 = vpop.permute.xlu0 %179  }
  0x95   :  { %240 = vst.msk [vmem:[%s388_s1 + $0x8] sm:$0xff] %vm171_vm2, %v180_v58  }
  0x9c   :  { %v202_v59 = vpop.permute.xlu1 %201  }
  0x9d   :  { %242 = vst.msk [vmem:[%s388_s1 + $0x18] sm:$0xff] %vm171_vm2, %v202_v59  }

// kernel: mobile_block_pallas.1
= control target key start
LH: loop header
LB: loop body
LE: loop exit
PB: predicated region body
PF: predicated region fallthrough
CT: control target
= control target key end

     0   :  { %vm65_vm0 = vcmask 1040384   ;;  %s1116_s17 = smov 120   ;;  %s1117_s18 = smov 8   ;;  %v11_v27 = vlaneseq  ;;  %s1754_s0 = inlined_call_operand.vmem [shape: f32[32,128], index: 0, kind: input, shape index: {}]   ;;  %s1755_s1 = inlined_call_operand.vmem [shape: f32[32,128], index: 1, kind: input, shape index: {}]   ;;  %s1756_s2 = inlined_call_operand.vmem [shape: f32[32,128], index: 2, kind: output, shape index: {}]  }
   0x1   :  { %v1150_v0 = vld [vmem:[%s1754_s0] sm:$0xff]  ;;  %v1155_v1 = vld [vmem:[%s1754_s0 + $0x8] sm:$0xff]  ;;  %v1160_v2 = vld [vmem:[%s1754_s0 + $0x10] sm:$0xff]  ;;  %s1118_s19 = smov 124   ;;  %s1119_s20 = smov 12  }
   0x2   :  { %v1165_v3 = vld [vmem:[%s1754_s0 + $0x18] sm:$0xff]  ;;  %v43_v4 = vadd.f32 %v1155_v1, %v1150_v0  ;;  %v52_v5 = vmul.f32 %v1150_v0, %v1150_v0  ;;  %v53_v6 = vmul.f32 %v1155_v1, %v1155_v1  ;;  %v54_v7 = vmul.f32 %v1160_v2, %v1160_v2  ;;  %s1120_s21 = smov 126   ;;  %s1121_s22 = smov 14   ;;  %v41_v57 = vld [vmem:[%s1755_s1] sm:$0x1] }
   0x3   :  { %v55_v9 = vmul.f32 %v1165_v3, %v1165_v3  ;;  %v12_v28 = vand.u32 127, %v11_v27  ;;  %s1122_s23 = smov 15   ;;  %s1123_s24 = smov 127   ;;  %v42_v61 = vld [vmem:[%s1755_s1 + $0x1] sm:$0x1] }
   0x4   :  { %v44_v8 = vadd.f32 %v43_v4, %v1160_v2  ;;  %v56_v10 = vadd.f32 %v53_v6, %v52_v5  ;;  %s1124_s29 = smov 16   ;;  %s1125_s30 = smov 32  }
   0x5   :  { %v1183_v30 = vand.u32 15, %v12_v28  ;;  %s1126_s3 = smov 48   ;;  %s1127_s26 = smov 1  }
   0x6   :  { %v45_v11 = vadd.f32 %v44_v8, %v1165_v3  ;;  %v57_v12 = vadd.f32 %v56_v10, %v54_v7 }
   0x7   :  { %vm23_vm1 = vcmp.lt.s32.totalorder %v1183_v30, 8  ;;  %vm24_vm2 = vcmp.lt.s32.totalorder %v1183_v30, 12  ;;  %vm25_vm3 = vcmp.lt.s32.totalorder %v1183_v30, 14  ;;  %vm26_vm4 = vcmp.lt.s32.totalorder %v1183_v30, 15 }
   0x8   :  { %v46_v13 = vrot.slane %v45_v11, 4  ;;  %v58_v14 = vadd.f32 %v57_v12, %v55_v9 }
   0xa   :  { %v47_v15 = vadd.f32 %v46_v13, %v45_v11  ;;  %v59_v16 = vrot.slane %v58_v14, 4 }
   0xc   :  { %v48_v17 = vrot.slane %v47_v15, 2  ;;  %v60_v18 = vadd.f32 %v59_v16, %v58_v14 }
   0xe   :  { %v49_v19 = vadd.f32 %v48_v17, %v47_v15  ;;  %v61_v20 = vrot.slane %v60_v18, 2 }
  0x10   :  { %v50_v21 = vrot.slane %v49_v19, 1  ;;  %v62_v22 = vadd.f32 %v61_v20, %v60_v18 }
  0x12   :  { %v51_v23 = vadd.f32 %v50_v21, %v49_v19  ;;  %v63_v24 = vrot.slane %v62_v22, 1 }
  0x14   :  { %v64_v25 = vadd.f32 %v63_v24, %v62_v22 }
  0x16   :  { %v66_v26 = vsel %vm65_vm0, %v51_v23, %v64_v25 }
  0x17   :  { %67 = vrot.lane.b32.xlu0 %v66_v26, %s1116_s17 }
  0x1f   :  { %69 = vrot.lane.b32.xlu0 %v66_v26, %s1117_s18 }
  0x89   :  { %v68_v29 = vpop.permute.xlu0 %67 }
  0x91   :  { %v70_v31 = vpop.permute.xlu0 %69 }
  0x92   :  { %v73_v32 = vsel %vm23_vm1, %v68_v29, %v70_v31 }
  0x93   :  { %v74_v33 = vadd.f32 %v73_v32, %v66_v26 }
  0x95   :  { %75 = vrot.lane.b32.xlu1 %v74_v33, %s1118_s19 }
  0x9d   :  { %77 = vrot.lane.b32.xlu1 %v74_v33, %s1119_s20 }
 0x107   :  { %v76_v34 = vpop.permute.xlu1 %75 }
 0x10f   :  { %v78_v35 = vpop.permute.xlu1 %77 }
 0x110   :  { %v81_v36 = vsel %vm24_vm2, %v76_v34, %v78_v35 }
 0x111   :  { %v82_v37 = vadd.f32 %v81_v36, %v74_v33 }
 0x113   :  { %83 = vrot.lane.b32.xlu2 %v82_v37, %s1120_s21 }
 0x11b   :  { %85 = vrot.lane.b32.xlu2 %v82_v37, %s1121_s22 }
 0x16d   :  { %v84_v38 = vpop.permute.xlu2 %83 }
 0x175   :  { %v86_v39 = vpop.permute.xlu2 %85 }
 0x176   :  { %v89_v40 = vsel %vm25_vm3, %v84_v38, %v86_v39 }
 0x177   :  { %v90_v41 = vadd.f32 %v89_v40, %v82_v37 }
 0x179   :  { %93 = vrot.lane.b32.xlu1 %v90_v41, %s1122_s23  ;;  %91 = vrot.lane.b32.xlu0 %v90_v41, %s1123_s24 }
 0x1eb   :  { %v94_v42 = vpop.permute.xlu1 %93  ;;  %v92_v43 = vpop.permute.xlu0 %91 }
 0x1ec   :  { %v97_v44 = vsel %vm26_vm4, %v92_v43, %v94_v42 }
 0x1ed   :  { %v98_v45 = vadd.f32 %v97_v44, %v90_v41 }
 0x1ef   :  { %v99_v46 = vmul.f32 0.001953125, %v98_v45 }
 0x1f1   :  { %v100_v47 = vmul.f32 %v99_v46, %v99_v46 }
 0x1f3   :  { %v102_v48 = vrot.slane %v100_v47, 7 }
 0x1f5   :  { %v104_v49 = vsub.f32 %v99_v46, %v102_v48 }
 0x1f7   :  { %v105_v50 = vadd.f32 1e-05, %v104_v49 }
 0x1f9   :  { %1058 = vrsqrt.f32 %v105_v50  ;;  %vm112_vm6 = vweird.f32 %v105_v50 }
 0x1ff   :  { %v1059_v51 = vpop.eup %1058 }
 0x200   :  { %v107_v52 = vmul.f32 %v1059_v51, %v105_v50  ;;  %vm113_vm5 = vweird.f32 %v1059_v51 }
 0x201   :  { %vm114_vm7 = vmor %vm112_vm6, %vm113_vm5 }
 0x202   :  { %v108_v53 = vmul.f32 %v1059_v51, %v107_v52 }
 0x204   :  { %v109_v54 = vmul.f32 0.5, %v108_v53 }
 0x206   :  { %v110_v55 = vsub.f32 1.5, %v109_v54 }
 0x208   :  { %v111_v56 = vmul.f32 %v1059_v51, %v110_v55 }
 0x20a   :  { %v115_v58 = vsel %vm114_vm7, %v1059_v51, %v111_v56 }
 0x20b   :  { %v117_v59 = vrot.slane %v115_v58, 1 }
 0x20d   :  { %v119_v60 = vmul.f32 %v117_v59, %v41_v57 }
 0x20f   :  { %v120_v62 = vmul.f32 %v119_v60, %v99_v46  ;;  %v122_v63 = vperm.slane %v119_v60, 0 }
 0x211   :  { %v121_v4 = vsub.f32 %v42_v61, %v120_v62  ;;  %v125_v5 = vmul.f32 %v122_v63, %v1160_v2  ;;  %v124_v7 = vmul.f32 %v122_v63, %v1155_v1  ;;  %v123_v8 = vmul.f32 %v122_v63, %v1150_v0 }
 0x212   :  { %v126_v9 = vmul.f32 %v122_v63, %v1165_v3 }
 0x213   :  { %v127_v6 = vperm.slane %v121_v4, 0 }
 0x215   :  { %v1213_v10 = vadd.f32 %v127_v6, %v125_v5  ;;  %v1215_v11 = vadd.f32 %v127_v6, %v124_v7  ;;  %v1217_v12 = vadd.f32 %v127_v6, %v123_v8  ;;  %v1219_v13 = vadd.f32 %v127_v6, %v126_v9 }
 0x217   :  { %v1222_v14 = vmul.f32 0.70710677, %v1213_v10  ;;  %v1225_v2 = vmul.f32 0.70710677, %v1215_v11  ;;  %v1228_v1 = vmul.f32 0.70710677, %v1217_v12 }
 0x218   :  { %v1231_v0 = vmul.f32 0.70710677, %v1219_v13 }
 0x219   :  { %v142_v3 = vand.u32 2147483647, %v1222_v14  ;;  %v141_v15 = vand.u32 2147483647, %v1225_v2  ;;  %v140_v16 = vand.u32 2147483647, %v1228_v1 }
 0x21a   :  { %v143_v17 = vand.u32 2147483647, %v1231_v0  ;;  %vm218_vm8 = vcmp.lt.f32.partialorder %v1222_v14, 0.0  ;;  %vm217_vm9 = vcmp.lt.f32.partialorder %v1225_v2, 0.0  ;;  %vm216_vm10 = vcmp.lt.f32.partialorder %v1228_v1, 0.0 }
 0x21b   :  { %v146_v18 = vmul.f32 0.3275911, %v142_v3  ;;  %v145_v19 = vmul.f32 0.3275911, %v141_v15  ;;  %v144_v20 = vmul.f32 0.3275911, %v140_v16 }
 0x21c   :  { %v147_v23 = vmul.f32 0.3275911, %v143_v17  ;;  %v194_v28 = vsub.f32 0.0, %v142_v3  ;;  %v193_v32 = vsub.f32 0.0, %v141_v15  ;;  %v192_v38 = vsub.f32 0.0, %v140_v16 }
 0x21d   :  { %v150_v21 = vadd.f32 1.0, %v146_v18  ;;  %v149_v22 = vadd.f32 1.0, %v145_v19  ;;  %v148_v24 = vadd.f32 1.0, %v144_v20  ;;  %v195_v44 = vsub.f32 0.0, %v143_v17 }
 0x21e   :  { %v151_v25 = vadd.f32 1.0, %v147_v23  ;;  %v198_v36 = vmul.f32 %v194_v28, %v142_v3  ;;  %v197_v40 = vmul.f32 %v193_v32, %v141_v15  ;;  %v196_v50 = vmul.f32 %v192_v38, %v140_v16 }
 0x21f   :  { %1060 = vrcp.f32 %v150_v21  ;;  %v199_v56 = vmul.f32 %v195_v44, %v143_v17  ;;  %v132_v2 = vmul.f32 0.5, %v1217_v12  ;;  %vm219_vm11 = vcmp.lt.f32.partialorder %v1231_v0, 0.0 }
 0x220   :  { %1062 = vrcp.f32 %v149_v22  ;;  %v204_v48 = vmul.f32 1.442695, %v198_v36  ;;  %v202_v52 = vmul.f32 1.442695, %v197_v40  ;;  %v200_v61 = vmul.f32 1.442695, %v196_v50 }
 0x221   :  { %1064 = vrcp.f32 %v148_v24  ;;  %v206_v6 = vmul.f32 1.442695, %v199_v56  ;;  %v135_v1 = vmul.f32 0.5, %v1219_v13 }
 0x222   :  { %1066 = vrcp.f32 %v151_v25 }
 0x223   :  { %1068 = vpow2.f32 %v204_v48 }
 0x224   :  { %1070 = vpow2.f32 %v202_v52 }
 0x225   :  { %v1061_v26 = vpop.eup %1060  ;;  %1072 = vpow2.f32 %v200_v61 }
 0x226   :  { %v1063_v29 = vpop.eup %1062  ;;  %v158_v31 = vmul.f32 1.0614054, %v1061_v26  ;;  %1074 = vpow2.f32 %v206_v6 }
 0x227   :  { %v157_v33 = vmul.f32 1.0614054, %v1063_v29  ;;  %v1065_v35 = vpop.eup %1064 }
 0x228   :  { %v162_v34 = vadd.f32 -1.4531521, %v158_v31  ;;  %v156_v41 = vmul.f32 1.0614054, %v1065_v35  ;;  %v1067_v42 = vpop.eup %1066 }
 0x229   :  { %v161_v37 = vadd.f32 -1.4531521, %v157_v33  ;;  %v159_v47 = vmul.f32 1.0614054, %v1067_v42  ;;  %v1069_v18 = vpop.eup %1068 }
 0x22a   :  { %v166_v39 = vmul.f32 %v1061_v26, %v162_v34  ;;  %v160_v46 = vadd.f32 -1.4531521, %v156_v41  ;;  %v1071_v20 = vpop.eup %1070  ;;  %v134_v41 = vmul.f32 0.5, %v1213_v10 }
 0x22b   :  { %v165_v43 = vmul.f32 %v1063_v29, %v161_v37  ;;  %v163_v54 = vadd.f32 -1.4531521, %v159_v47  ;;  %v1073_v32 = vpop.eup %1072 }
 0x22c   :  { %v170_v45 = vadd.f32 1.4214138, %v166_v39  ;;  %v164_v53 = vmul.f32 %v1065_v35, %v160_v46  ;;  %v1075_v38 = vpop.eup %1074 }
 0x22d   :  { %v169_v49 = vadd.f32 1.4214138, %v165_v43  ;;  %v167_v59 = vmul.f32 %v1067_v42, %v163_v54  ;;  %v1035_v54 = vld [vmem:[%s1755_s1 + $0xa] ss:$0 sm:$0xff] }
 0x22e   :  { %v174_v51 = vmul.f32 %v1061_v26, %v170_v45  ;;  %v168_v58 = vadd.f32 1.4214138, %v164_v53 }
 0x22f   :  { %v173_v55 = vmul.f32 %v1063_v29, %v169_v49  ;;  %v171_v4 = vadd.f32 1.4214138, %v167_v59 }
 0x230   :  { %v178_v57 = vadd.f32 -0.28449672, %v174_v51  ;;  %v172_v63 = vmul.f32 %v1065_v35, %v168_v58  ;;  %v1036_v58 = vld [vmem:[%s1755_s1 + $0xb] ss:$0 sm:$0xff] }
 0x231   :  { %v177_v60 = vadd.f32 -0.28449672, %v173_v55  ;;  %v175_v9 = vmul.f32 %v1067_v42, %v171_v4 }
 0x232   :  { %v182_v62 = vmul.f32 %v1061_v26, %v178_v57  ;;  %v176_v8 = vadd.f32 -0.28449672, %v172_v63  ;;  %v1034_v57 = vld [vmem:[%s1755_s1 + $0x9] ss:$0 sm:$0xff] }
 0x233   :  { %v181_v5 = vmul.f32 %v1063_v29, %v177_v60  ;;  %v179_v17 = vadd.f32 -0.28449672, %v175_v9 }
 0x234   :  { %v186_v7 = vadd.f32 0.2548296, %v182_v62  ;;  %v180_v16 = vmul.f32 %v1065_v35, %v176_v8  ;;  %v1037_v62 = vld [vmem:[%s1755_s1 + $0xc] ss:$0 sm:$0xff] }
 0x235   :  { %v185_v3 = vadd.f32 0.2548296, %v181_v5  ;;  %v183_v23 = vmul.f32 %v1067_v42, %v179_v17 }
 0x236   :  { %v190_v15 = vmul.f32 %v1061_v26, %v186_v7  ;;  %v184_v22 = vadd.f32 0.2548296, %v180_v16 }
 0x237   :  { %v189_v19 = vmul.f32 %v1063_v29, %v185_v3  ;;  %v187_v31 = vadd.f32 0.2548296, %v183_v23 }
 0x238   :  { %v210_v21 = vmul.f32 %v1069_v18, %v190_v15  ;;  %v188_v28 = vmul.f32 %v1065_v35, %v184_v22  ;;  %v133_v35 = vmul.f32 0.5, %v1215_v11 }
 0x239   :  { %v209_v24 = vmul.f32 %v1071_v20, %v189_v19  ;;  %v191_v37 = vmul.f32 %v1067_v42, %v187_v31 }
 0x23a   :  { %v214_v25 = vsub.f32 1.0, %v210_v21  ;;  %v208_v36 = vmul.f32 %v1073_v32, %v188_v28 }
 0x23b   :  { %v213_v33 = vsub.f32 1.0, %v209_v24  ;;  %v211_v40 = vmul.f32 %v1075_v38, %v191_v37  ;;  %v1038_v24 = vld [vmem:[%s1755_s1 + $0x2] ss:$0 sm:$0xff] }
 0x23c   :  { %v222_v34 = vsub.f32 0.0, %v214_v25  ;;  %v212_v29 = vsub.f32 1.0, %v208_v36 }
 0x23d   :  { %v221_v26 = vsub.f32 0.0, %v213_v33  ;;  %v215_v47 = vsub.f32 1.0, %v211_v40 }
 0x23e   :  { %v226_v39 = vsel %vm218_vm8, %v222_v34, %v214_v25  ;;  %v220_v46 = vsub.f32 0.0, %v212_v29 }
 0x23f   :  { %v230_v43 = vadd.f32 1.0, %v226_v39  ;;  %v225_v44 = vsel %vm217_vm9, %v221_v26, %v213_v33  ;;  %v223_v49 = vsub.f32 0.0, %v215_v47 }
 0x240   :  { %v229_v45 = vadd.f32 1.0, %v225_v44  ;;  %v224_v14 = vsel %vm216_vm10, %v220_v46, %v212_v29 }
 0x241   :  { %v234_v48 = vmul.f32 %v230_v43, %v134_v41  ;;  %v228_v50 = vadd.f32 1.0, %v224_v14  ;;  %v227_v10 = vsel %vm219_vm11, %v223_v49, %v215_v47 }
 0x242   :  { %v233_v42 = vmul.f32 %v229_v45, %v133_v35  ;;  %v231_v51 = vadd.f32 1.0, %v227_v10 }
 0x243   :  { %246 = vrot.lane.b32.xlu1 %v234_v48, %s1124_s29  ;;  %v232_v11 = vmul.f32 %v228_v50, %v132_v2  ;;  %v240_v22 = vmul.f32 %v1034_v57, %v234_v48 }
 0x244   :  { %244 = vrot.lane.b32.xlu0 %v233_v42, %s1124_s29  ;;  %v235_v52 = vmul.f32 %v231_v51, %v135_v1  ;;  %v239_v5 = vmul.f32 %v1034_v57, %v233_v42 }
 0x245   :  { %242 = vrot.lane.b32.xlu2 %v232_v11, %s1124_s29  ;;  %v238_v63 = vmul.f32 %v1034_v57, %v232_v11 }
 0x246   :  { %v241_v21 = vmul.f32 %v1034_v57, %v235_v52 }
 0x24b   :  { %248 = vrot.lane.b32.xlu1 %v235_v52, %s1124_s29 }
 0x24c   :  { %262 = vrot.lane.b32.xlu0 %v233_v42, %s1125_s30 }
 0x24d   :  { %260 = vrot.lane.b32.xlu2 %v232_v11, %s1125_s30 }
 0x253   :  { %280 = vrot.lane.b32.xlu1 %v233_v42, %s1126_s3 }
 0x254   :  { %278 = vrot.lane.b32.xlu0 %v232_v11, %s1126_s3 }
 0x255   :  { %264 = vrot.lane.b32.xlu2 %v234_v48, %s1125_s30 }
 0x25b   :  { %284 = vrot.lane.b32.xlu1 %v235_v52, %s1126_s3 }
 0x25c   :  { %282 = vrot.lane.b32.xlu0 %v234_v48, %s1126_s3 }
 0x25d   :  { %266 = vrot.lane.b32.xlu2 %v235_v52, %s1125_s30 }
 0x29f   :  { %v243_v12 = vpop.permute.xlu2 %242 }
 0x2a0   :  { %v252_v60 = vmul.f32 %v1035_v54, %v243_v12 }
 0x2a2   :  { %v256_v7 = vadd.f32 %v252_v60, %v238_v63 }
 0x2a7   :  { %v261_v13 = vpop.permute.xlu2 %260 }
 0x2a8   :  { %v270_v4 = vmul.f32 %v1036_v58, %v261_v13 }
 0x2aa   :  { %v274_v17 = vadd.f32 %v270_v4, %v256_v7 }
 0x2af   :  { %v265_v59 = vpop.permute.xlu2 %264 }
 0x2b0   :  { %v272_v34 = vmul.f32 %v1036_v58, %v265_v59 }
 0x2b5   :  { %v247_v0 = vpop.permute.xlu1 %246 }
 0x2b6   :  { %v245_v53 = vpop.permute.xlu0 %244  ;;  %v254_v18 = vmul.f32 %v1035_v54, %v247_v0 }
 0x2b7   :  { %v253_v61 = vmul.f32 %v1035_v54, %v245_v53  ;;  %v267_v23 = vpop.permute.xlu2 %266 }
 0x2b8   :  { %v258_v32 = vadd.f32 %v254_v18, %v240_v22  ;;  %v273_v33 = vmul.f32 %v1036_v58, %v267_v23 }
 0x2b9   :  { %v257_v8 = vadd.f32 %v253_v61, %v239_v5 }
 0x2ba   :  { %v276_v40 = vadd.f32 %v272_v34, %v258_v32 }
 0x2bd   :  { %v249_v55 = vpop.permute.xlu1 %248 }
 0x2be   :  { %v263_v56 = vpop.permute.xlu0 %262  ;;  %v255_v3 = vmul.f32 %v1035_v54, %v249_v55 }
 0x2bf   :  { %v271_v6 = vmul.f32 %v1036_v58, %v263_v56 }
 0x2c0   :  { %v259_v31 = vadd.f32 %v255_v3, %v241_v21 }
 0x2c1   :  { %v275_v19 = vadd.f32 %v271_v6, %v257_v8 }
 0x2c2   :  { %v277_v26 = vadd.f32 %v273_v33, %v259_v31 }
 0x2c5   :  { %v281_v9 = vpop.permute.xlu1 %280 }
 0x2c6   :  { %v289_v15 = vmul.f32 %v1037_v62, %v281_v9  ;;  %v279_v16 = vpop.permute.xlu0 %278 }
 0x2c7   :  { %v288_v20 = vmul.f32 %v1037_v62, %v279_v16 }
 0x2c8   :  { %v293_v25 = vadd.f32 %v289_v15, %v275_v19 }
 0x2c9   :  { %v292_v28 = vadd.f32 %v288_v20, %v274_v17 }
 0x2ca   :  { %v1272_v36 = vadd.f32 %v1038_v24, %v293_v25 }
 0x2cb   :  { %v1274_v37 = vadd.f32 %v1038_v24, %v292_v28 }
 0x2cc   :  { %v314_v44 = vmul.f32 %v1272_v36, %v1272_v36 }
 0x2cd   :  { %v285_v38 = vpop.permute.xlu1 %284  ;;  %v313_v35 = vmul.f32 %v1274_v37, %v1274_v37  ;;  %v304_v46 = vadd.f32 %v1272_v36, %v1274_v37 }
 0x2ce   :  { %v291_v39 = vmul.f32 %v1037_v62, %v285_v38  ;;  %v283_v29 = vpop.permute.xlu0 %282  ;;  %v302_v38 = vld [vmem:[%s1755_s1 + $0x3] sm:$0x1] }
 0x2cf   :  { %v290_v41 = vmul.f32 %v1037_v62, %v283_v29  ;;  %v317_v42 = vadd.f32 %v314_v44, %v313_v35 }
 0x2d0   :  { %v295_v43 = vadd.f32 %v291_v39, %v277_v26 }
 0x2d1   :  { %v294_v45 = vadd.f32 %v290_v41, %v276_v40  ;;  %v303_v40 = vld [vmem:[%s1755_s1 + $0x4] sm:$0x1] }
 0x2d2   :  { %v1282_v47 = vadd.f32 %v1038_v24, %v295_v43 }
 0x2d3   :  { %v1284_v48 = vadd.f32 %v1038_v24, %v294_v45 }
 0x2d4   :  { %v316_v2 = vmul.f32 %v1282_v47, %v1282_v47 }
 0x2d5   :  { %v305_v14 = vadd.f32 %v304_v46, %v1284_v48  ;;  %v315_v49 = vmul.f32 %v1284_v48, %v1284_v48 }
 0x2d7   :  { %v306_v50 = vadd.f32 %v305_v14, %v1282_v47  ;;  %v318_v10 = vadd.f32 %v317_v42, %v315_v49 }
 0x2d9   :  { %v307_v11 = vrot.slane %v306_v50, 4  ;;  %v319_v51 = vadd.f32 %v318_v10, %v316_v2 }
 0x2db   :  { %v308_v1 = vadd.f32 %v307_v11, %v306_v50  ;;  %v320_v52 = vrot.slane %v319_v51, 4 }
 0x2dd   :  { %v309_v12 = vrot.slane %v308_v1, 2  ;;  %v321_v13 = vadd.f32 %v320_v52, %v319_v51 }
 0x2df   :  { %v310_v0 = vadd.f32 %v309_v12, %v308_v1  ;;  %v322_v53 = vrot.slane %v321_v13, 2 }
 0x2e1   :  { %v311_v54 = vrot.slane %v310_v0, 1  ;;  %v323_v55 = vadd.f32 %v322_v53, %v321_v13 }
 0x2e3   :  { %v324_v56 = vrot.slane %v323_v55, 1  ;;  %v312_v57 = vadd.f32 %v311_v54, %v310_v0 }
 0x2e5   :  { %v325_v58 = vadd.f32 %v324_v56, %v323_v55 }
 0x2e7   :  { %v326_v59 = vsel %vm65_vm0, %v312_v57, %v325_v58 }
 0x2e8   :  { %329 = vrot.lane.b32.xlu0 %v326_v59, %s1117_s18  ;;  %327 = vrot.lane.b32.xlu2 %v326_v59, %s1116_s17 }
 0x342   :  { %v328_v60 = vpop.permute.xlu2 %327 }
 0x35a   :  { %v330_v61 = vpop.permute.xlu0 %329 }
 0x35b   :  { %v331_v62 = vsel %vm23_vm1, %v328_v60, %v330_v61 }
 0x35c   :  { %v332_v63 = vadd.f32 %v331_v62, %v326_v59 }
 0x35e   :  { %335 = vrot.lane.b32.xlu2 %v332_v63, %s1119_s20  ;;  %333 = vrot.lane.b32.xlu1 %v332_v63, %s1118_s19 }
 0x3b8   :  { %v336_v4 = vpop.permute.xlu2 %335 }
 0x3d0   :  { %v334_v5 = vpop.permute.xlu1 %333 }
 0x3d1   :  { %v337_v6 = vsel %vm24_vm2, %v334_v5, %v336_v4 }
 0x3d2   :  { %v338_v7 = vadd.f32 %v337_v6, %v332_v63 }
 0x3d4   :  { %341 = vrot.lane.b32.xlu1 %v338_v7, %s1121_s22  ;;  %339 = vrot.lane.b32.xlu0 %v338_v7, %s1120_s21 }
 0x446   :  { %v342_v8 = vpop.permute.xlu1 %341  ;;  %v340_v9 = vpop.permute.xlu0 %339 }
 0x447   :  { %v343_v3 = vsel %vm25_vm3, %v340_v9, %v342_v8 }
 0x448   :  { %v344_v15 = vadd.f32 %v343_v3, %v338_v7 }
 0x44a   :  { %347 = vrot.lane.b32.xlu0 %v344_v15, %s1122_s23  ;;  %345 = vrot.lane.b32.xlu2 %v344_v15, %s1123_s24 }
 0x4a4   :  { %v346_v16 = vpop.permute.xlu2 %345 }
 0x4bc   :  { %v348_v17 = vpop.permute.xlu0 %347 }
 0x4bd   :  { %v349_v18 = vsel %vm26_vm4, %v346_v16, %v348_v17 }
 0x4be   :  { %v350_v19 = vadd.f32 %v349_v18, %v344_v15 }
 0x4c0   :  { %v351_v20 = vmul.f32 0.001953125, %v350_v19 }
 0x4c2   :  { %v352_v21 = vmul.f32 %v351_v20, %v351_v20 }
 0x4c4   :  { %v354_v22 = vrot.slane %v352_v21, 7 }
 0x4c6   :  { %v356_v23 = vsub.f32 %v351_v20, %v354_v22 }
 0x4c8   :  { %v357_v24 = vadd.f32 1e-05, %v356_v23 }
 0x4ca   :  { %1076 = vrsqrt.f32 %v357_v24  ;;  %vm364_vm13 = vweird.f32 %v357_v24 }
 0x4d0   :  { %v1077_v25 = vpop.eup %1076 }
 0x4d1   :  { %v359_v28 = vmul.f32 %v1077_v25, %v357_v24  ;;  %vm365_vm12 = vweird.f32 %v1077_v25 }
 0x4d2   :  { %vm366_vm14 = vmor %vm364_vm13, %vm365_vm12 }
 0x4d3   :  { %v360_v31 = vmul.f32 %v1077_v25, %v359_v28 }
 0x4d5   :  { %v361_v32 = vmul.f32 0.5, %v360_v31 }
 0x4d7   :  { %v362_v33 = vsub.f32 1.5, %v361_v32 }
 0x4d9   :  { %v363_v34 = vmul.f32 %v1077_v25, %v362_v33 }
 0x4db   :  { %v367_v26 = vsel %vm366_vm14, %v1077_v25, %v363_v34  ;;  %vm28_vm14 = vcmp.ge.s32.totalorder %v1183_v30, 1 }
 0x4dc   :  { %v369_v39 = vrot.slane %v367_v26, 1 }
 0x4de   :  { %v371_v29 = vmul.f32 %v369_v39, %v302_v38 }
 0x4e0   :  { %v372_v41 = vmul.f32 %v371_v29, %v351_v20  ;;  %v374_v43 = vperm.slane %v371_v29, 0 }
 0x4e2   :  { %v373_v44 = vsub.f32 %v303_v40, %v372_v41  ;;  %v377_v35 = vmul.f32 %v374_v43, %v1284_v48  ;;  %v376_v46 = vmul.f32 %v374_v43, %v1272_v36  ;;  %v375_v42 = vmul.f32 %v374_v43, %v1274_v37 }
 0x4e3   :  { %v378_v14 = vmul.f32 %v374_v43, %v1282_v47 }
 0x4e4   :  { %v379_v45 = vperm.slane %v373_v44, 0 }
 0x4e6   :  { %v1319_v49 = vadd.f32 %v379_v45, %v377_v35  ;;  %v1321_v2 = vadd.f32 %v379_v45, %v376_v46  ;;  %v1323_v50 = vadd.f32 %v379_v45, %v375_v42  ;;  %v1325_v10 = vadd.f32 %v379_v45, %v378_v14 }
 0x4e8   :  { %v1328_v11 = vmul.f32 0.70710677, %v1319_v49  ;;  %v1331_v48 = vmul.f32 0.70710677, %v1321_v2  ;;  %v1334_v36 = vmul.f32 0.70710677, %v1323_v50 }
 0x4e9   :  { %v1337_v37 = vmul.f32 0.70710677, %v1325_v10 }
 0x4ea   :  { %v394_v47 = vand.u32 2147483647, %v1328_v11  ;;  %v393_v51 = vand.u32 2147483647, %v1331_v48  ;;  %v392_v1 = vand.u32 2147483647, %v1334_v36 }
 0x4eb   :  { %v395_v52 = vand.u32 2147483647, %v1337_v37  ;;  %vm470_vm15 = vcmp.lt.f32.partialorder %v1328_v11, 0.0  ;;  %vm469_vm5 = vcmp.lt.f32.partialorder %v1331_v48, 0.0  ;;  %vm468_vm6 = vcmp.lt.f32.partialorder %v1334_v36, 0.0 }
 0x4ec   :  { %v398_v12 = vmul.f32 0.3275911, %v394_v47  ;;  %v397_v13 = vmul.f32 0.3275911, %v393_v51  ;;  %v396_v0 = vmul.f32 0.3275911, %v392_v1 }
 0x4ed   :  { %v399_v55 = vmul.f32 0.3275911, %v395_v52  ;;  %v446_v59 = vsub.f32 0.0, %v394_v47  ;;  %v445_v61 = vsub.f32 0.0, %v393_v51  ;;  %v444_v8 = vsub.f32 0.0, %v392_v1 }
 0x4ee   :  { %v402_v53 = vadd.f32 1.0, %v398_v12  ;;  %v401_v54 = vadd.f32 1.0, %v397_v13  ;;  %v400_v56 = vadd.f32 1.0, %v396_v0  ;;  %v447_v18 = vsub.f32 0.0, %v395_v52 }
 0x4ef   :  { %v403_v57 = vadd.f32 1.0, %v399_v55  ;;  %v450_v6 = vmul.f32 %v446_v59, %v394_v47  ;;  %v449_v9 = vmul.f32 %v445_v61, %v393_v51  ;;  %v448_v24 = vmul.f32 %v444_v8, %v392_v1 }
 0x4f0   :  { %1078 = vrcp.f32 %v402_v53  ;;  %v451_v34 = vmul.f32 %v447_v18, %v395_v52  ;;  %v384_v11 = vmul.f32 0.5, %v1323_v50  ;;  %vm471_vm7 = vcmp.lt.f32.partialorder %v1337_v37, 0.0 }
 0x4f1   :  { %1080 = vrcp.f32 %v401_v54  ;;  %v456_v22 = vmul.f32 1.442695, %v450_v6  ;;  %v454_v25 = vmul.f32 1.442695, %v449_v9  ;;  %v452_v40 = vmul.f32 1.442695, %v448_v24 }
 0x4f2   :  { %1082 = vrcp.f32 %v400_v56  ;;  %v458_v45 = vmul.f32 1.442695, %v451_v34  ;;  %v386_v48 = vmul.f32 0.5, %v1319_v49  ;;  %v387_v36 = vmul.f32 0.5, %v1325_v10 }
 0x4f3   :  { %1084 = vrcp.f32 %v403_v57  ;;  %v15_v49 = vshrl.u32 %v11_v27, 7 }
 0x4f4   :  { %1086 = vpow2.f32 %v456_v22 }
 0x4f5   :  { %1088 = vpow2.f32 %v454_v25  ;;  %vm492_vm8 = vcmp.lt.s32.totalorder %v15_v49, 1  ;;  %vm613_vm9 = vcmp.lt.s32.totalorder %v15_v49, 7  ;;  %v19_v34 = vand.u32 15, %v15_v49 }
 0x4f6   :  { %v1079_v58 = vpop.eup %1078  ;;  %1090 = vpow2.f32 %v452_v40 }
 0x4f7   :  { %v1081_v60 = vpop.eup %1080  ;;  %v410_v62 = vmul.f32 1.0614054, %v1079_v58  ;;  %1092 = vpow2.f32 %v458_v45  ;;  %vm33_vm10 = vcmp.ge.s32.totalorder %v19_v34, 1 }
 0x4f8   :  { %v409_v63 = vmul.f32 1.0614054, %v1081_v60  ;;  %v1083_v5 = vpop.eup %1082 }
 0x4f9   :  { %v414_v4 = vadd.f32 -1.4531521, %v410_v62  ;;  %v408_v3 = vmul.f32 1.0614054, %v1083_v5  ;;  %v1085_v16 = vpop.eup %1084 }
 0x4fa   :  { %v413_v7 = vadd.f32 -1.4531521, %v409_v63  ;;  %v411_v20 = vmul.f32 1.0614054, %v1085_v16  ;;  %v1087_v12 = vpop.eup %1086 }
 0x4fb   :  { %v418_v15 = vmul.f32 %v1079_v58, %v414_v4  ;;  %v412_v19 = vadd.f32 -1.4531521, %v408_v3  ;;  %v1089_v0 = vpop.eup %1088 }
 0x4fc   :  { %v417_v17 = vmul.f32 %v1081_v60, %v413_v7  ;;  %v415_v31 = vadd.f32 -1.4531521, %v411_v20  ;;  %v1091_v62 = vpop.eup %1090 }
 0x4fd   :  { %v422_v21 = vadd.f32 1.4214138, %v418_v15  ;;  %v416_v28 = vmul.f32 %v1083_v5, %v412_v19  ;;  %v1093_v8 = vpop.eup %1092 }
 0x4fe   :  { %v421_v23 = vadd.f32 1.4214138, %v417_v17  ;;  %v419_v26 = vmul.f32 %v1085_v16, %v415_v31  ;;  %v385_v17 = vmul.f32 0.5, %v1321_v2 }
 0x4ff   :  { %v426_v32 = vmul.f32 %v1079_v58, %v422_v21  ;;  %v420_v38 = vadd.f32 1.4214138, %v416_v28 }
 0x500   :  { %v425_v33 = vmul.f32 %v1081_v60, %v421_v23  ;;  %v423_v43 = vadd.f32 1.4214138, %v419_v26 }
 0x501   :  { %v430_v39 = vadd.f32 -0.28449672, %v426_v32  ;;  %v424_v41 = vmul.f32 %v1083_v5, %v420_v38 }
 0x502   :  { %v429_v29 = vadd.f32 -0.28449672, %v425_v33  ;;  %v427_v42 = vmul.f32 %v1085_v16, %v423_v43  ;;  %v16_v43 = vadd.s32 8, %v15_v49 }
 0x503   :  { %v434_v44 = vmul.f32 %v1079_v58, %v430_v39  ;;  %v428_v46 = vadd.f32 -0.28449672, %v424_v41  ;;  %v17_v41 = vadd.s32 16, %v15_v49 }
 0x504   :  { %v433_v35 = vmul.f32 %v1081_v60, %v429_v29  ;;  %v431_v1 = vadd.f32 -0.28449672, %v427_v42 }
 0x505   :  { %v438_v14 = vadd.f32 0.2548296, %v434_v44  ;;  %v432_v51 = vmul.f32 %v1083_v5, %v428_v46  ;;  %v21_v44 = vand.u32 15, %v17_v41 }
 0x506   :  { %v437_v47 = vadd.f32 0.2548296, %v433_v35  ;;  %v435_v54 = vmul.f32 %v1085_v16, %v431_v1  ;;  %v20_v35 = vand.u32 15, %v16_v43 }
 0x507   :  { %v442_v52 = vmul.f32 %v1079_v58, %v438_v14  ;;  %v436_v53 = vadd.f32 0.2548296, %v432_v51  ;;  %vm35_vm11 = vcmp.ge.s32.totalorder %v21_v44, 1 }
 0x508   :  { %v441_v13 = vmul.f32 %v1081_v60, %v437_v47  ;;  %v439_v59 = vadd.f32 0.2548296, %v435_v54  ;;  %vm30_vm12 = vcmp.le.s32.totalorder %v20_v35, 14  ;;  %v18_v47 = vadd.s32 24, %v15_v49 }
 0x509   :  { %v462_v55 = vmul.f32 %v1087_v12, %v442_v52  ;;  %v440_v57 = vmul.f32 %v1083_v5, %v436_v53 }
 0x50a   :  { %v461_v56 = vmul.f32 %v1089_v0, %v441_v13  ;;  %v443_v6 = vmul.f32 %v1085_v16, %v439_v59  ;;  %v22_v52 = vand.u32 15, %v18_v47 }
 0x50b   :  { %v466_v61 = vsub.f32 1.0, %v462_v55  ;;  %v460_v4 = vmul.f32 %v1091_v62, %v440_v57 }
 0x50c   :  { %v465_v63 = vsub.f32 1.0, %v461_v56  ;;  %v463_v60 = vmul.f32 %v1093_v8, %v443_v6  ;;  %vm32_vm13 = vcmp.le.s32.totalorder %v22_v52, 14 }
 0x50d   :  { %v474_v7 = vsub.f32 0.0, %v466_v61  ;;  %v464_v58 = vsub.f32 1.0, %v460_v4 }
 0x50e   :  { %v473_v9 = vsub.f32 0.0, %v465_v63  ;;  %v467_v19 = vsub.f32 1.0, %v463_v60 }
 0x50f   :  { %v478_v15 = vsel %vm470_vm15, %v474_v7, %v466_v61  ;;  %v472_v18 = vsub.f32 0.0, %v464_v58  ;;  %v1440_v61 = vld [vmem:[%s1755_s1 + $0xd] ss:$0 sm:$0xff]  ;;  %v1451_v7 = vld [vmem:[%s1755_s1 + $0xf] ss:$0 sm:$0xff]  ;;  %vm27_vm15 = vcmp.le.s32.totalorder %v1183_v30, 14 }
 0x510   :  { %v477_v3 = vsel %vm469_vm5, %v473_v9, %v465_v63  ;;  %v475_v21 = vsub.f32 0.0, %v467_v19  ;;  %v482_v22 = vadd.f32 1.0, %v478_v15  ;;  %v1039_v63 = vld [vmem:[%s1755_s1 + $0xe] ss:$0 sm:$0xff]  ;;  %v1461_v15 = vld [vmem:[%s1755_s1 + $0x10] ss:$0 sm:$0xff] }
 0x511   :  { %v481_v5 = vadd.f32 1.0, %v477_v3  ;;  %v476_v16 = vsel %vm468_vm6, %v472_v18, %v464_v58  ;;  %v1467_v18 = vld [vmem:[%s1755_s1 + $0x11] ss:$0 sm:$0xff]  ;;  %v682_v30 = vld [vmem:[%s1755_s1 + $0x6] sm:$0x1] }
 0x512   :  { %v480_v23 = vadd.f32 1.0, %v476_v16  ;;  %v479_v2 = vsel %vm471_vm7, %v475_v21, %v467_v19  ;;  %v1357_v28 = vmul.f32 %v482_v22, %v386_v48  ;;  %v1472_v19 = vld [vmem:[%s1755_s1 + $0x12] ss:$0 sm:$0xff]  ;;  %v1482_v48 = vld [vmem:[%s1755_s1 + $0x13] ss:$0 sm:$0xff] }
 0x513   :  { %v1347_v20 = vmul.f32 %v481_v5, %v385_v17  ;;  %v483_v25 = vadd.f32 1.0, %v479_v2 }
 0x514   :  { %v1354_v24 = vmul.f32 %v480_v23, %v384_v11  ;;  %v490_v37 = vrot.slane %v1357_v28, 7  ;;  %v611_v45 = vrot.slane %v1357_v28, 1 }
 0x515   :  { %557 = vrot.lane.b32.xlu0 %v1347_v20, %s1127_s26  ;;  %v1363_v50 = vmul.f32 %v483_v25, %v387_v36  ;;  %v610_v27 = vrot.slane %v1347_v20, 1  ;;  %v489_v26 = vrot.slane %v1347_v20, 7  ;;  %v580_v2 = vmul.f32 %v1467_v18, %v1347_v20  ;;  %v1489_v36 = vld [vmem:[%s1755_s1 + $0x14] ss:$0 sm:$0xff] }
 0x516   :  { %587 = vrot.lane.b32.xlu1 %v1354_v24, %s1123_s24  ;;  %555 = vrot.lane.b32.xlu2 %v1354_v24, %s1127_s26  ;;  %v609_v32 = vrot.slane %v1354_v24, 1  ;;  %v488_v38 = vrot.slane %v1354_v24, 7 }
 0x517   :  { %v491_v31 = vrot.slane %v1363_v50, 7  ;;  %v494_v46 = vsel %vm492_vm8, %v489_v26, %v490_v37  ;;  %v615_v14 = vsel %vm613_vm9, %v610_v27, %v611_v45  ;;  %v612_v1 = vrot.slane %v1363_v50, 1 }
 0x518   :  { %v1382_v33 = vsel %vm613_vm9, %v609_v32, %v610_v27  ;;  %v495_v40 = vsel %vm492_vm8, %v488_v38, %v489_v26  ;;  %v1406_v42 = vsel %vm35_vm11, %v494_v46, 0.0  ;;  %v619_v51 = vsel %vm30_vm12, %v615_v14, 0.0 }
 0x519   :  { %v1371_v10 = vsel %vm492_vm8, %v490_v37, %v491_v31  ;;  %v496_v39 = vsel %vm492_vm8, %v491_v31, %v488_v38  ;;  %v617_v12 = vsel %vm613_vm9, %v612_v1, %v609_v32  ;;  %v1419_v13 = vsel %vm613_vm9, %v611_v45, %v612_v1 }
 0x51a   :  { %v1393_v29 = vsel %vm33_vm10, %v496_v39, 0.0  ;;  %v1421_v0 = vsel %vm32_vm13, %v617_v12, 0.0  ;;  %v524_v8 = vmul.f32 %v1039_v63, %v495_v40  ;;  %v647_v38 = vmul.f32 %v1489_v36, %v619_v51 }
 0x51b   :  { %v526_v46 = vmul.f32 %v1039_v63, %v1371_v10  ;;  %v523_v47 = vmul.f32 %v1039_v63, %v1393_v29 }
 0x51d   :  { %561 = vrot.lane.b32.xlu0 %v1363_v50, %s1127_s26 }
 0x51e   :  { %537 = vrot.lane.b32.xlu1 %v1371_v10, %s1123_s24  ;;  %559 = vrot.lane.b32.xlu2 %v1357_v28, %s1127_s26 }
 0x525   :  { %591 = vrot.lane.b32.xlu0 %v1357_v28, %s1123_s24 }
 0x526   :  { %589 = vrot.lane.b32.xlu2 %v1347_v20, %s1123_s24  ;;  %622 = vrot.lane.b32.xlu1 %v1382_v33, %s1127_s26 }
 0x52d   :  { %593 = vrot.lane.b32.xlu0 %v1363_v50, %s1123_s24 }
 0x52e   :  { %501 = vrot.lane.b32.xlu1 %v1393_v29, %s1127_s26  ;;  %503 = vrot.lane.b32.xlu2 %v495_v40, %s1127_s26 }
 0x535   :  { %507 = vrot.lane.b32.xlu0 %v1371_v10, %s1127_s26 }
 0x536   :  { %531 = vrot.lane.b32.xlu1 %v1393_v29, %s1123_s24  ;;  %533 = vrot.lane.b32.xlu2 %v495_v40, %s1123_s24 }
 0x53d   :  { %505 = vrot.lane.b32.xlu0 %v1406_v42, %s1127_s26 }
 0x53e   :  { %535 = vrot.lane.b32.xlu1 %v1406_v42, %s1123_s24  ;;  %624 = vrot.lane.b32.xlu2 %v619_v51, %s1127_s26 }
 0x545   :  { %654 = vrot.lane.b32.xlu0 %v1382_v33, %s1123_s24 }
 0x546   :  { %626 = vrot.lane.b32.xlu1 %v1419_v13, %s1127_s26  ;;  %628 = vrot.lane.b32.xlu2 %v1421_v0, %s1127_s26 }
 0x54d   :  { %660 = vrot.lane.b32.xlu0 %v1421_v0, %s1123_s24 }
 0x54e   :  { %656 = vrot.lane.b32.xlu1 %v619_v51, %s1123_s24  ;;  %658 = vrot.lane.b32.xlu2 %v1419_v13, %s1123_s24 }
 0x570   :  { %v556_v53 = vpop.permute.xlu2 %555 }
 0x571   :  { %v563_v52 = vsel %vm28_vm14, %v556_v53, 0.0  ;;  %v525_v53 = vmul.f32 %v1039_v63, %v1406_v42 }
 0x578   :  { %v1432_v54 = vpop.permute.xlu2 %559 }
 0x580   :  { %v590_v55 = vpop.permute.xlu2 %589 }
 0x581   :  { %v596_v22 = vsel %vm27_vm15, %v590_v55, 0.0 }
 0x582   :  { %v602_v25 = vmul.f32 %v1472_v19, %v596_v22 }
 0x587   :  { %v558_v56 = vpop.permute.xlu0 %557 }
 0x588   :  { %v1434_v57 = vpop.permute.xlu1 %587  ;;  %v504_v59 = vpop.permute.xlu2 %503  ;;  %v564_v60 = vsel %vm28_vm14, %v558_v56, 0.0 }
 0x589   :  { %v512_v62 = vsel %vm28_vm14, %v504_v59, 0.0  ;;  %v570_v16 = vmul.f32 %v1461_v15, %v564_v60  ;;  %v582_v60 = vmul.f32 %v1467_v18, %v1363_v50 }
 0x58a   :  { %v518_v6 = vmul.f32 %v1440_v61, %v512_v62 }
 0x58c   :  { %v528_v17 = vadd.f32 %v524_v8, %v518_v6  ;;  %v569_v8 = vmul.f32 %v1461_v15, %v563_v52 }
 0x58f   :  { %v562_v4 = vpop.permute.xlu0 %561 }
 0x590   :  { %v538_v9 = vpop.permute.xlu1 %537  ;;  %v534_v58 = vpop.permute.xlu2 %533  ;;  %v566_v51 = vsel %vm28_vm14, %v562_v4, 0.0 }
 0x591   :  { %v542_v3 = vsel %vm27_vm15, %v534_v58, 0.0  ;;  %v544_v44 = vsel %vm27_vm15, %v538_v9, 0.0  ;;  %v572_v62 = vmul.f32 %v1461_v15, %v566_v51  ;;  %v595_v58 = vsel %vm27_vm15, %v1434_v57, 0.0 }
 0x592   :  { %v548_v5 = vmul.f32 %v1451_v7, %v542_v3  ;;  %v550_v12 = vmul.f32 %v1451_v7, %v544_v44 }
 0x594   :  { %v552_v21 = vadd.f32 %v548_v5, %v528_v17 }
 0x596   :  { %v574_v23 = vadd.f32 %v570_v16, %v552_v21  ;;  %v579_v16 = vmul.f32 %v1467_v18, %v1354_v24 }
 0x597   :  { %v1477_v11 = vpop.permute.xlu0 %591 }
 0x598   :  { %v623_v49 = vpop.permute.xlu1 %622  ;;  %v625_v37 = vpop.permute.xlu2 %624  ;;  %v584_v31 = vadd.f32 %v580_v2, %v574_v23  ;;  %v565_v23 = vsel %vm28_vm14, %v1432_v54, 0.0  ;;  %v601_v2 = vmul.f32 %v1472_v19, %v595_v58 }
 0x599   :  { %v631_v32 = vsel %vm28_vm14, %v625_v37, 0.0  ;;  %v630_v42 = vsel %vm28_vm14, %v623_v49, 0.0 }
 0x59a   :  { %v606_v27 = vadd.f32 %v602_v25, %v584_v31  ;;  %v637_v34 = vmul.f32 %v1482_v48, %v631_v32 }
 0x59c   :  { %v641_v26 = vadd.f32 %v637_v34, %v606_v27  ;;  %v636_v27 = vmul.f32 %v1482_v48, %v630_v42 }
 0x59e   :  { %v1496_v39 = vadd.f32 %v647_v38, %v641_v26  ;;  %v649_v38 = vmul.f32 %v1489_v36, %v1421_v0  ;;  %v646_v26 = vmul.f32 %v1489_v36, %v1382_v33 }
 0x59f   :  { %v594_v20 = vpop.permute.xlu0 %593 }
 0x5a0   :  { %v502_v40 = vpop.permute.xlu1 %501  ;;  %v629_v6 = vpop.permute.xlu2 %628  ;;  %v598_v4 = vsel %vm27_vm15, %v594_v20, 0.0  ;;  %v571_v20 = vmul.f32 %v1461_v15, %v565_v23 }
 0x5a1   :  { %v511_v41 = vsel %vm28_vm14, %v502_v40, 0.0  ;;  %v633_v5 = vsel %vm28_vm14, %v629_v6, 0.0  ;;  %v604_v57 = vmul.f32 %v1472_v19, %v598_v4 }
 0x5a2   :  { %v517_v35 = vmul.f32 %v1440_v61, %v511_v41  ;;  %v639_v37 = vmul.f32 %v1482_v48, %v633_v5 }
 0x5a4   :  { %v527_v59 = vadd.f32 %v523_v47, %v517_v35 }
 0x5a7   :  { %v508_v43 = vpop.permute.xlu0 %507 }
 0x5a8   :  { %v514_v45 = vsel %vm28_vm14, %v508_v43, 0.0  ;;  %v532_v1 = vpop.permute.xlu1 %531  ;;  %v597_v43 = vsel %vm27_vm15, %v1477_v11, 0.0  ;;  %v1047_v11 = vld [vmem:[%s1755_s1 + $0x15] ss:$0 sm:$0xff]  ;;  %v659_v51 = vpop.permute.xlu2 %658 }
 0x5a9   :  { %v520_v14 = vmul.f32 %v1440_v61, %v514_v45  ;;  %v541_v56 = vsel %vm27_vm15, %v532_v1, 0.0  ;;  %v603_v0 = vmul.f32 %v1472_v19, %v597_v43 }
 0x5aa   :  { %v547_v10 = vmul.f32 %v1451_v7, %v541_v56 }
 0x5ab   :  { %v530_v55 = vadd.f32 %v526_v46, %v520_v14  ;;  %v581_v46 = vmul.f32 %v1467_v18, %v1357_v28  ;;  %v648_v28 = vmul.f32 %v1489_v36, %v1419_v13 }
 0x5ac   :  { %v551_v9 = vadd.f32 %v547_v10, %v527_v59 }
 0x5ad   :  { %v554_v29 = vadd.f32 %v550_v12, %v530_v55  ;;  %v664_v12 = vsel %vm27_vm15, %v659_v51, 0.0 }
 0x5ae   :  { %v573_v21 = vadd.f32 %v569_v8, %v551_v9  ;;  %v670_v10 = vmul.f32 %v1047_v11, %v664_v12 }
 0x5af   :  { %v576_v3 = vadd.f32 %v572_v62, %v554_v29  ;;  %v506_v17 = vpop.permute.xlu0 %505  ;;  %v1048_v62 = vld [vmem:[%s1755_s1 + $0x5] ss:$0 sm:$0xff] }
 0x5b0   :  { %v513_v22 = vsel %vm28_vm14, %v506_v17, 0.0  ;;  %v583_v25 = vadd.f32 %v579_v16, %v573_v21  ;;  %v536_v24 = vpop.permute.xlu1 %535 }
 0x5b1   :  { %v586_v63 = vadd.f32 %v582_v60, %v576_v3  ;;  %v519_v50 = vmul.f32 %v1440_v61, %v513_v22  ;;  %v543_v32 = vsel %vm27_vm15, %v536_v24, 0.0 }
 0x5b2   :  { %v549_v34 = vmul.f32 %v1451_v7, %v543_v32  ;;  %v605_v61 = vadd.f32 %v601_v2, %v583_v25 }
 0x5b3   :  { %v529_v31 = vadd.f32 %v525_v53, %v519_v50  ;;  %v608_v49 = vadd.f32 %v604_v57, %v586_v63 }
 0x5b4   :  { %v640_v41 = vadd.f32 %v636_v27, %v605_v61 }
 0x5b5   :  { %v643_v54 = vadd.f32 %v639_v37, %v608_v49  ;;  %v553_v40 = vadd.f32 %v549_v34, %v529_v31 }
 0x5b6   :  { %v650_v7 = vadd.f32 %v646_v26, %v640_v41 }
 0x5b7   :  { %v655_v44 = vpop.permute.xlu0 %654  ;;  %v653_v35 = vadd.f32 %v649_v38, %v643_v54  ;;  %v575_v45 = vadd.f32 %v571_v20, %v553_v40 }
 0x5b8   :  { %v627_v47 = vpop.permute.xlu1 %626  ;;  %v662_v33 = vsel %vm27_vm15, %v655_v44, 0.0 }
 0x5b9   :  { %v585_v14 = vadd.f32 %v581_v46, %v575_v45  ;;  %v632_v15 = vsel %vm28_vm14, %v627_v47, 0.0  ;;  %v668_v18 = vmul.f32 %v1047_v11, %v662_v33 }
 0x5ba   :  { %v638_v52 = vmul.f32 %v1482_v48, %v632_v15 }
 0x5bb   :  { %v607_v1 = vadd.f32 %v603_v0, %v585_v14  ;;  %v672_v6 = vadd.f32 %v668_v18, %v650_v7 }
 0x5bd   :  { %v642_v19 = vadd.f32 %v638_v52, %v607_v1  ;;  %v1575_v4 = vadd.f32 %v1048_v62, %v672_v6 }
 0x5bf   :  { %v661_v55 = vpop.permute.xlu0 %660  ;;  %v652_v56 = vadd.f32 %v648_v28, %v642_v19  ;;  %v693_v3 = vmul.f32 %v1575_v4, %v1575_v4 }
 0x5c0   :  { %v665_v59 = vsel %vm27_vm15, %v661_v55, 0.0  ;;  %v657_v29 = vpop.permute.xlu1 %656 }
 0x5c1   :  { %v671_v48 = vmul.f32 %v1047_v11, %v665_v59  ;;  %v663_v13 = vsel %vm27_vm15, %v657_v29, 0.0  ;;  %v674_v36 = vadd.f32 %v670_v10, %v652_v56  ;;  %v683_v29 = vld [vmem:[%s1755_s1 + $0x7] sm:$0x1] }
 0x5c2   :  { %v669_v8 = vmul.f32 %v1047_v11, %v663_v13 }
 0x5c3   :  { %v675_v9 = vadd.f32 %v671_v48, %v653_v35  ;;  %v1578_v58 = vadd.f32 %v1048_v62, %v674_v36 }
 0x5c4   :  { %v673_v53 = vadd.f32 %v669_v8, %v1496_v39 }
 0x5c5   :  { %v1584_v17 = vadd.f32 %v1048_v62, %v675_v9  ;;  %v695_v21 = vmul.f32 %v1578_v58, %v1578_v58 }
 0x5c6   :  { %v1580_v60 = vadd.f32 %v1048_v62, %v673_v53 }
 0x5c7   :  { %v696_v42 = vmul.f32 %v1584_v17, %v1584_v17 }
 0x5c8   :  { %v684_v5 = vadd.f32 %v1580_v60, %v1575_v4  ;;  %v694_v16 = vmul.f32 %v1580_v60, %v1580_v60 }
 0x5ca   :  { %v685_v39 = vadd.f32 %v684_v5, %v1578_v58  ;;  %v697_v22 = vadd.f32 %v694_v16, %v693_v3 }
 0x5cc   :  { %v698_v57 = vadd.f32 %v697_v22, %v695_v21  ;;  %v686_v63 = vadd.f32 %v685_v39, %v1584_v17 }
 0x5ce   :  { %v687_v50 = vrot.slane %v686_v63, 4  ;;  %v699_v23 = vadd.f32 %v698_v57, %v696_v42 }
 0x5d0   :  { %v688_v2 = vadd.f32 %v687_v50, %v686_v63  ;;  %v700_v25 = vrot.slane %v699_v23, 4 }
 0x5d2   :  { %v689_v24 = vrot.slane %v688_v2, 2  ;;  %v701_v37 = vadd.f32 %v700_v25, %v699_v23 }
 0x5d4   :  { %v690_v31 = vadd.f32 %v689_v24, %v688_v2  ;;  %v702_v32 = vrot.slane %v701_v37, 2 }
 0x5d6   :  { %v691_v49 = vrot.slane %v690_v31, 1  ;;  %v703_v27 = vadd.f32 %v702_v32, %v701_v37 }
 0x5d8   :  { %v704_v34 = vrot.slane %v703_v27, 1  ;;  %v692_v61 = vadd.f32 %v691_v49, %v690_v31 }
 0x5da   :  { %v705_v38 = vadd.f32 %v704_v34, %v703_v27 }
 0x5dc   :  { %v706_v54 = vsel %vm65_vm0, %v692_v61, %v705_v38 }
 0x5dd   :  { %709 = vrot.lane.b32.xlu2 %v706_v54, %s1117_s18  ;;  %707 = vrot.lane.b32.xlu1 %v706_v54, %s1116_s17 }
 0x637   :  { %v710_v26 = vpop.permute.xlu2 %709 }
 0x64f   :  { %v708_v20 = vpop.permute.xlu1 %707 }
 0x650   :  { %v711_v40 = vsel %vm23_vm1, %v708_v20, %v710_v26 }
 0x651   :  { %v712_v41 = vadd.f32 %v711_v40, %v706_v54 }
 0x653   :  { %715 = vrot.lane.b32.xlu1 %v712_v41, %s1119_s20  ;;  %713 = vrot.lane.b32.xlu0 %v712_v41, %s1118_s19 }
 0x6c5   :  { %v716_v43 = vpop.permute.xlu1 %715  ;;  %v714_v44 = vpop.permute.xlu0 %713 }
 0x6c6   :  { %v717_v35 = vsel %vm24_vm2, %v714_v44, %v716_v43 }
 0x6c7   :  { %v718_v45 = vadd.f32 %v717_v35, %v712_v41 }
 0x6c9   :  { %721 = vrot.lane.b32.xlu0 %v718_v45, %s1121_s22  ;;  %719 = vrot.lane.b32.xlu2 %v718_v45, %s1120_s21  ;;  %s1128_s21 = smov 64   ;;  %s1129_s22 = smov 80  }
 0x723   :  { %v720_v7 = vpop.permute.xlu2 %719 }
 0x73b   :  { %v722_v46 = vpop.permute.xlu0 %721 }
 0x73c   :  { %v723_v0 = vsel %vm25_vm3, %v720_v7, %v722_v46 }
 0x73d   :  { %v724_v14 = vadd.f32 %v723_v0, %v718_v45 }
 0x73f   :  { %727 = vrot.lane.b32.xlu2 %v724_v14, %s1122_s23  ;;  %725 = vrot.lane.b32.xlu1 %v724_v14, %s1123_s24  ;;  %s1130_s23 = smov 96   ;;  %s1131_s24 = smov 112  }
 0x799   :  { %v728_v47 = vpop.permute.xlu2 %727 }
 0x7b1   :  { %v726_v33 = vpop.permute.xlu1 %725 }
 0x7b2   :  { %v729_v15 = vsel %vm26_vm4, %v726_v33, %v728_v47 }
 0x7b3   :  { %v730_v11 = vadd.f32 %v729_v15, %v724_v14 }
 0x7b5   :  { %v731_v51 = vmul.f32 0.001953125, %v730_v11 }
 0x7b7   :  { %v732_v1 = vmul.f32 %v731_v51, %v731_v51 }
 0x7b9   :  { %v734_v52 = vrot.slane %v732_v1, 7 }
 0x7bb   :  { %v736_v28 = vsub.f32 %v731_v51, %v734_v52 }
 0x7bd   :  { %v737_v18 = vadd.f32 1e-05, %v736_v28 }
 0x7bf   :  { %1094 = vrsqrt.f32 %v737_v18  ;;  %vm744_vm1 = vweird.f32 %v737_v18 }
 0x7c5   :  { %v1095_v19 = vpop.eup %1094 }
 0x7c6   :  { %v739_v12 = vmul.f32 %v1095_v19, %v737_v18  ;;  %vm745_vm0 = vweird.f32 %v1095_v19 }
 0x7c7   :  { %vm746_vm2 = vmor %vm744_vm1, %vm745_vm0 }
 0x7c8   :  { %v740_v55 = vmul.f32 %v1095_v19, %v739_v12 }
 0x7ca   :  { %v741_v56 = vmul.f32 0.5, %v740_v55 }
 0x7cc   :  { %v742_v59 = vsub.f32 1.5, %v741_v56 }
 0x7ce   :  { %v743_v10 = vmul.f32 %v1095_v19, %v742_v59 }
 0x7d0   :  { %v747_v62 = vsel %vm746_vm2, %v1095_v19, %v743_v10 }
 0x7d1   :  { %v749_v6 = vrot.slane %v747_v62, 1 }
 0x7d3   :  { %v751_v48 = vmul.f32 %v749_v6, %v682_v30 }
 0x7d5   :  { %v752_v13 = vmul.f32 %v751_v48, %v731_v51  ;;  %v754_v36 = vperm.slane %v751_v48, 0 }
 0x7d7   :  { %v753_v8 = vsub.f32 %v683_v29, %v752_v13  ;;  %v755_v9 = vmul.f32 %v754_v36, %v1575_v4  ;;  %v756_v53 = vmul.f32 %v754_v36, %v1580_v60  ;;  %v757_v3 = vmul.f32 %v754_v36, %v1578_v58 }
 0x7d8   :  { %v758_v5 = vmul.f32 %v754_v36, %v1584_v17 }
 0x7d9   :  { %v759_v16 = vperm.slane %v753_v8, 0 }
 0x7db   :  { %v1623_v21 = vadd.f32 %v759_v16, %v755_v9  ;;  %v1625_v39 = vadd.f32 %v759_v16, %v756_v53  ;;  %v1627_v22 = vadd.f32 %v759_v16, %v757_v3  ;;  %v1629_v42 = vadd.f32 %v759_v16, %v758_v5 }
 0x7dd   :  { %v1632_v57 = vmul.f32 0.70710677, %v1623_v21  ;;  %v1635_v4 = vmul.f32 0.70710677, %v1625_v39  ;;  %v1638_v60 = vmul.f32 0.70710677, %v1627_v22 }
 0x7de   :  { %v1641_v58 = vmul.f32 0.70710677, %v1629_v42 }
 0x7df   :  { %v772_v17 = vand.u32 2147483647, %v1632_v57  ;;  %v773_v63 = vand.u32 2147483647, %v1635_v4  ;;  %v774_v50 = vand.u32 2147483647, %v1638_v60 }
 0x7e0   :  { %v775_v23 = vand.u32 2147483647, %v1641_v58  ;;  %vm848_vm3 = vcmp.lt.f32.partialorder %v1632_v57, 0.0  ;;  %vm849_vm4 = vcmp.lt.f32.partialorder %v1635_v4, 0.0  ;;  %vm850_vm5 = vcmp.lt.f32.partialorder %v1638_v60, 0.0 }
 0x7e1   :  { %v776_v2 = vmul.f32 0.3275911, %v772_v17  ;;  %v777_v25 = vmul.f32 0.3275911, %v773_v63  ;;  %v778_v24 = vmul.f32 0.3275911, %v774_v50 }
 0x7e2   :  { %v779_v37 = vmul.f32 0.3275911, %v775_v23  ;;  %v824_v61 = vsub.f32 0.0, %v772_v17  ;;  %v825_v26 = vsub.f32 0.0, %v773_v63  ;;  %v826_v41 = vsub.f32 0.0, %v774_v50 }
 0x7e3   :  { %v780_v31 = vadd.f32 1.0, %v776_v2  ;;  %v781_v32 = vadd.f32 1.0, %v777_v25  ;;  %v782_v49 = vadd.f32 1.0, %v778_v24  ;;  %v827_v45 = vsub.f32 0.0, %v775_v23 }
 0x7e4   :  { %v783_v27 = vadd.f32 1.0, %v779_v37  ;;  %v828_v0 = vmul.f32 %v824_v61, %v772_v17  ;;  %v829_v33 = vmul.f32 %v825_v26, %v773_v63  ;;  %v830_v51 = vmul.f32 %v826_v41, %v774_v50 }
 0x7e5   :  { %1096 = vrcp.f32 %v780_v31  ;;  %v831_v28 = vmul.f32 %v827_v45, %v775_v23  ;;  %vm851_vm6 = vcmp.lt.f32.partialorder %v1641_v58, 0.0 }
 0x7e6   :  { %1098 = vrcp.f32 %v781_v32  ;;  %v832_v12 = vmul.f32 1.442695, %v828_v0  ;;  %v834_v59 = vmul.f32 1.442695, %v829_v33  ;;  %v836_v62 = vmul.f32 1.442695, %v830_v51 }
 0x7e7   :  { %1100 = vrcp.f32 %v782_v49  ;;  %v838_v29 = vmul.f32 1.442695, %v831_v28 }
 0x7e8   :  { %1102 = vrcp.f32 %v783_v27 }
 0x7e9   :  { %1104 = vpow2.f32 %v832_v12 }
 0x7ea   :  { %1106 = vpow2.f32 %v834_v59 }
 0x7eb   :  { %v1097_v34 = vpop.eup %1096  ;;  %1108 = vpow2.f32 %v836_v62 }
 0x7ec   :  { %v1099_v38 = vpop.eup %1098  ;;  %v788_v54 = vmul.f32 1.0614054, %v1097_v34  ;;  %1110 = vpow2.f32 %v838_v29 }
 0x7ed   :  { %v1101_v20 = vpop.eup %1100  ;;  %v789_v40 = vmul.f32 1.0614054, %v1099_v38 }
 0x7ee   :  { %v1103_v43 = vpop.eup %1102  ;;  %v790_v44 = vmul.f32 1.0614054, %v1101_v20  ;;  %v792_v35 = vadd.f32 -1.4531521, %v788_v54 }
 0x7ef   :  { %v791_v7 = vmul.f32 1.0614054, %v1103_v43  ;;  %v793_v46 = vadd.f32 -1.4531521, %v789_v40  ;;  %v1105_v2 = vpop.eup %1104 }
 0x7f0   :  { %v794_v14 = vadd.f32 -1.4531521, %v790_v44  ;;  %v796_v47 = vmul.f32 %v1097_v34, %v792_v35  ;;  %v1107_v37 = vpop.eup %1106 }
 0x7f1   :  { %v795_v15 = vadd.f32 -1.4531521, %v791_v7  ;;  %v797_v11 = vmul.f32 %v1099_v38, %v793_v46  ;;  %v1109_v49 = vpop.eup %1108  ;;  %v764_v46 = vmul.f32 0.5, %v1623_v21 }
 0x7f2   :  { %v798_v1 = vmul.f32 %v1101_v20, %v794_v14  ;;  %v800_v52 = vadd.f32 1.4214138, %v796_v47  ;;  %v1111_v54 = vpop.eup %1110  ;;  %v765_v47 = vmul.f32 0.5, %v1625_v39 }
 0x7f3   :  { %v799_v18 = vmul.f32 %v1103_v43, %v795_v15  ;;  %v801_v19 = vadd.f32 1.4214138, %v797_v11  ;;  %v766_v11 = vmul.f32 0.5, %v1627_v22  ;;  %v767_v22 = vmul.f32 0.5, %v1629_v42 }
 0x7f4   :  { %v802_v55 = vadd.f32 1.4214138, %v798_v1  ;;  %v804_v56 = vmul.f32 %v1097_v34, %v800_v52 }
 0x7f5   :  { %v803_v10 = vadd.f32 1.4214138, %v799_v18  ;;  %v805_v30 = vmul.f32 %v1099_v38, %v801_v19 }
 0x7f6   :  { %v806_v6 = vmul.f32 %v1101_v20, %v802_v55  ;;  %v808_v48 = vadd.f32 -0.28449672, %v804_v56 }
 0x7f7   :  { %v807_v13 = vmul.f32 %v1103_v43, %v803_v10  ;;  %v809_v36 = vadd.f32 -0.28449672, %v805_v30 }
 0x7f8   :  { %v810_v8 = vadd.f32 -0.28449672, %v806_v6  ;;  %v812_v9 = vmul.f32 %v1097_v34, %v808_v48 }
 0x7f9   :  { %v811_v53 = vadd.f32 -0.28449672, %v807_v13  ;;  %v813_v3 = vmul.f32 %v1099_v38, %v809_v36  ;;  %v1050_v36 = vld [vmem:[%s1755_s1 + $0x17] ss:$0 sm:$0xff] }
 0x7fa   :  { %v814_v5 = vmul.f32 %v1101_v20, %v810_v8  ;;  %v816_v16 = vadd.f32 0.2548296, %v812_v9 }
 0x7fb   :  { %v815_v17 = vmul.f32 %v1103_v43, %v811_v53  ;;  %v817_v63 = vadd.f32 0.2548296, %v813_v3  ;;  %v1049_v53 = vld [vmem:[%s1755_s1 + $0x16] ss:$0 sm:$0xff] }
 0x7fc   :  { %v818_v50 = vadd.f32 0.2548296, %v814_v5  ;;  %v820_v23 = vmul.f32 %v1097_v34, %v816_v16  ;;  %v1051_v5 = vld [vmem:[%s1755_s1 + $0x18] ss:$0 sm:$0xff] }
 0x7fd   :  { %v819_v25 = vadd.f32 0.2548296, %v815_v17  ;;  %v821_v24 = vmul.f32 %v1099_v38, %v817_v63  ;;  %v1052_v17 = vld [vmem:[%s1755_s1 + $0x19] ss:$0 sm:$0xff] }
 0x7fe   :  { %v822_v31 = vmul.f32 %v1101_v20, %v818_v50  ;;  %v840_v32 = vmul.f32 %v1105_v2, %v820_v23 }
 0x7ff   :  { %v823_v27 = vmul.f32 %v1103_v43, %v819_v25  ;;  %v841_v61 = vmul.f32 %v1107_v37, %v821_v24 }
 0x800   :  { %v842_v26 = vmul.f32 %v1109_v49, %v822_v31  ;;  %v844_v40 = vsub.f32 1.0, %v840_v32 }
 0x801   :  { %v843_v41 = vmul.f32 %v1111_v54, %v823_v27  ;;  %v845_v44 = vsub.f32 1.0, %v841_v61  ;;  %v1053_v61 = vld [vmem:[%s1755_s1 + $0x1a] ss:$0 sm:$0xff] }
 0x802   :  { %v846_v35 = vsub.f32 1.0, %v842_v26  ;;  %v852_v45 = vsub.f32 0.0, %v844_v40 }
 0x803   :  { %v847_v7 = vsub.f32 1.0, %v843_v41  ;;  %v853_v34 = vsub.f32 0.0, %v845_v44  ;;  %v1054_v41 = vld [vmem:[%s1755_s1 + $0x1b] ss:$0 sm:$0xff] }
 0x804   :  { %v854_v38 = vsub.f32 0.0, %v846_v35  ;;  %v856_v20 = vsel %vm848_vm3, %v852_v45, %v844_v40 }
 0x805   :  { %v855_v43 = vsub.f32 0.0, %v847_v7  ;;  %v857_v0 = vsel %vm849_vm4, %v853_v34, %v845_v44  ;;  %v860_v14 = vadd.f32 1.0, %v856_v20 }
 0x806   :  { %v858_v33 = vsel %vm850_vm5, %v854_v38, %v846_v35  ;;  %v861_v15 = vadd.f32 1.0, %v857_v0  ;;  %v1055_v0 = vld [vmem:[%s1755_s1 + $0x1c] ss:$0 sm:$0xff] }
 0x807   :  { %v862_v57 = vadd.f32 1.0, %v858_v33  ;;  %v1654_v51 = vmul.f32 %v860_v14, %v764_v46  ;;  %v859_v21 = vsel %vm851_vm6, %v855_v43, %v847_v7  ;;  %v1056_v33 = vld [vmem:[%s1755_s1 + $0x1d] ss:$0 sm:$0xff] }
 0x808   :  { %v1656_v4 = vmul.f32 %v861_v15, %v765_v47  ;;  %v863_v39 = vadd.f32 1.0, %v859_v21 }
 0x809   :  { %v866_v1 = vmul.f32 %v862_v57, %v766_v11  ;;  %874 = vrot.lane.b32.xlu0 %v1654_v51, %s1124_s29  ;;  %v870_v31 = vmul.f32 %v1049_v53, %v1654_v51 }
 0x80a   :  { %876 = vrot.lane.b32.xlu1 %v1656_v4, %s1124_s29  ;;  %v1664_v60 = vmul.f32 %v863_v39, %v767_v22  ;;  %v871_v27 = vmul.f32 %v1049_v53, %v1656_v4 }
 0x80b   :  { %878 = vrot.lane.b32.xlu2 %v866_v1, %s1124_s29  ;;  %v872_v16 = vmul.f32 %v1049_v53, %v866_v1 }
 0x80c   :  { %v873_v57 = vmul.f32 %v1049_v53, %v1664_v60 }
 0x811   :  { %880 = vrot.lane.b32.xlu0 %v1664_v60, %s1124_s29 }
 0x812   :  { %892 = vrot.lane.b32.xlu1 %v1654_v51, %s1125_s30 }
 0x813   :  { %894 = vrot.lane.b32.xlu2 %v1656_v4, %s1125_s30 }
 0x819   :  { %896 = vrot.lane.b32.xlu0 %v866_v1, %s1125_s30 }
 0x81a   :  { %898 = vrot.lane.b32.xlu1 %v1664_v60, %s1125_s30 }
 0x81b   :  { %910 = vrot.lane.b32.xlu2 %v1654_v51, %s1126_s3 }
 0x821   :  { %912 = vrot.lane.b32.xlu0 %v1656_v4, %s1126_s3 }
 0x822   :  { %914 = vrot.lane.b32.xlu1 %v866_v1, %s1126_s3 }
 0x823   :  { %916 = vrot.lane.b32.xlu2 %v1664_v60, %s1126_s3 }
 0x829   :  { %928 = vrot.lane.b32.xlu0 %v1654_v51, %s1128_s21 }
 0x82a   :  { %930 = vrot.lane.b32.xlu1 %v1656_v4, %s1128_s21 }
 0x82b   :  { %932 = vrot.lane.b32.xlu2 %v866_v1, %s1128_s21 }
 0x831   :  { %934 = vrot.lane.b32.xlu0 %v1664_v60, %s1128_s21 }
 0x832   :  { %946 = vrot.lane.b32.xlu1 %v1654_v51, %s1129_s22 }
 0x833   :  { %948 = vrot.lane.b32.xlu2 %v1656_v4, %s1129_s22 }
 0x839   :  { %950 = vrot.lane.b32.xlu0 %v866_v1, %s1129_s22 }
 0x83a   :  { %952 = vrot.lane.b32.xlu1 %v1664_v60, %s1129_s22 }
 0x83b   :  { %964 = vrot.lane.b32.xlu2 %v1654_v51, %s1130_s23 }
 0x841   :  { %966 = vrot.lane.b32.xlu0 %v1656_v4, %s1130_s23 }
 0x842   :  { %968 = vrot.lane.b32.xlu1 %v866_v1, %s1130_s23 }
 0x843   :  { %970 = vrot.lane.b32.xlu2 %v1664_v60, %s1130_s23 }
 0x849   :  { %982 = vrot.lane.b32.xlu0 %v1654_v51, %s1131_s24 }
 0x84a   :  { %984 = vrot.lane.b32.xlu1 %v1656_v4, %s1131_s24 }
 0x84b   :  { %986 = vrot.lane.b32.xlu2 %v866_v1, %s1131_s24 }
 0x851   :  { %988 = vrot.lane.b32.xlu0 %v1664_v60, %s1131_s24 }
 0x865   :  { %v879_v42 = vpop.permute.xlu2 %878 }
 0x866   :  { %v886_v3 = vmul.f32 %v1050_v36, %v879_v42 }
 0x868   :  { %v890_v2 = vadd.f32 %v886_v3, %v872_v16 }
 0x86d   :  { %v895_v58 = vpop.permute.xlu2 %894 }
 0x86e   :  { %v903_v45 = vmul.f32 %v1051_v5, %v895_v58 }
 0x875   :  { %v911_v52 = vpop.permute.xlu2 %910 }
 0x876   :  { %v920_v38 = vmul.f32 %v1052_v17, %v911_v52 }
 0x87b   :  { %v875_v28 = vpop.permute.xlu0 %874 }
 0x87c   :  { %v877_v18 = vpop.permute.xlu1 %876  ;;  %v884_v50 = vmul.f32 %v1050_v36, %v875_v28 }
 0x87d   :  { %v1694_v19 = vpop.permute.xlu2 %916  ;;  %v885_v25 = vmul.f32 %v1050_v36, %v877_v18 }
 0x87e   :  { %v888_v26 = vadd.f32 %v884_v50, %v870_v31 }
 0x87f   :  { %v889_v40 = vadd.f32 %v885_v25, %v871_v27  ;;  %v1112_v25 = vld [vmem:[%s1754_s0 + $0x10] sm:$0xff]  ;;  %v1113_v27 = vld [vmem:[%s1754_s0] sm:$0xff] }
 0x881   :  { %v907_v14 = vadd.f32 %v903_v45, %v889_v40  ;;  %v1115_v45 = vld [vmem:[%s1754_s0 + $0x18] sm:$0xff] }
 0x883   :  { %v881_v12 = vpop.permute.xlu0 %880 }
 0x884   :  { %v893_v55 = vpop.permute.xlu1 %892  ;;  %v887_v20 = vmul.f32 %v1050_v36, %v881_v12 }
 0x885   :  { %v933_v59 = vpop.permute.xlu2 %932  ;;  %v902_v32 = vmul.f32 %v1051_v5, %v893_v55  ;;  %v1057_v55 = vld [vmem:[%s1755_s1 + $0x8] ss:$0 sm:$0xff] }
 0x886   :  { %v940_v7 = vmul.f32 %v1053_v61, %v933_v59  ;;  %v891_v52 = vadd.f32 %v887_v20, %v873_v57 }
 0x887   :  { %v906_v35 = vadd.f32 %v902_v32, %v888_v26 }
 0x889   :  { %v924_v21 = vadd.f32 %v920_v38, %v906_v35 }
 0x88b   :  { %v897_v56 = vpop.permute.xlu0 %896 }
 0x88c   :  { %v899_v10 = vpop.permute.xlu1 %898  ;;  %v904_v63 = vmul.f32 %v1051_v5, %v897_v56 }
 0x88d   :  { %v949_v6 = vpop.permute.xlu2 %948  ;;  %v905_v51 = vmul.f32 %v1051_v5, %v899_v10 }
 0x88e   :  { %v908_v54 = vadd.f32 %v904_v63, %v890_v2  ;;  %v957_v60 = vmul.f32 %v1054_v41, %v949_v6 }
 0x88f   :  { %v909_v59 = vadd.f32 %v905_v51, %v891_v52 }
 0x893   :  { %v913_v30 = vpop.permute.xlu0 %912 }
 0x894   :  { %v915_v62 = vpop.permute.xlu1 %914  ;;  %v921_v34 = vmul.f32 %v1052_v17, %v913_v30 }
 0x895   :  { %v965_v13 = vpop.permute.xlu2 %964  ;;  %v922_v24 = vmul.f32 %v1052_v17, %v915_v62 }
 0x896   :  { %v925_v22 = vadd.f32 %v921_v34, %v907_v14 }
 0x897   :  { %v926_v44 = vadd.f32 %v922_v24, %v908_v54  ;;  %v1114_v54 = vld [vmem:[%s1754_s0 + $0x8] sm:$0xff] }
 0x899   :  { %v944_v15 = vadd.f32 %v940_v7, %v926_v44 }
 0x89b   :  { %v929_v48 = vpop.permute.xlu0 %928 }
 0x89c   :  { %v931_v29 = vpop.permute.xlu1 %930  ;;  %v938_v43 = vmul.f32 %v1053_v61, %v929_v48  ;;  %v923_v48 = vmul.f32 %v1052_v17, %v1694_v19 }
 0x89d   :  { %v1708_v23 = vpop.permute.xlu2 %970  ;;  %v939_v47 = vmul.f32 %v1053_v61, %v931_v29  ;;  %v974_v29 = vmul.f32 %v1055_v0, %v965_v13 }
 0x89e   :  { %v942_v28 = vadd.f32 %v938_v43, %v924_v21  ;;  %v927_v5 = vadd.f32 %v923_v48, %v909_v59 }
 0x89f   :  { %v943_v18 = vadd.f32 %v939_v47, %v925_v22 }
 0x8a1   :  { %v961_v53 = vadd.f32 %v957_v60, %v943_v18 }
 0x8a3   :  { %v935_v8 = vpop.permute.xlu0 %934 }
 0x8a4   :  { %v947_v9 = vpop.permute.xlu1 %946  ;;  %v941_v36 = vmul.f32 %v1053_v61, %v935_v8 }
 0x8a5   :  { %v987_v4 = vpop.permute.xlu2 %986  ;;  %v956_v1 = vmul.f32 %v1054_v41, %v947_v9 }
 0x8a6   :  { %v994_v12 = vmul.f32 %v1056_v33, %v987_v4  ;;  %v945_v31 = vadd.f32 %v941_v36, %v927_v5 }
 0x8a7   :  { %v960_v30 = vadd.f32 %v956_v1, %v942_v28 }
 0x8a9   :  { %v978_v50 = vadd.f32 %v974_v29, %v960_v30 }
 0x8ab   :  { %v951_v37 = vpop.permute.xlu0 %950 }
 0x8ac   :  { %v953_v49 = vpop.permute.xlu1 %952  ;;  %v958_v46 = vmul.f32 %v1054_v41, %v951_v37 }
 0x8ad   :  { %v959_v16 = vmul.f32 %v1054_v41, %v953_v49  ;;  %v977_v49 = vmul.f32 %v1055_v0, %v1708_v23 }
 0x8ae   :  { %v962_v42 = vadd.f32 %v958_v46, %v944_v15 }
 0x8af   :  { %v963_v13 = vadd.f32 %v959_v16, %v945_v31 }
 0x8b1   :  { %v981_v41 = vadd.f32 %v977_v49, %v963_v13 }
 0x8b3   :  { %v967_v11 = vpop.permute.xlu0 %966 }
 0x8b4   :  { %v969_v39 = vpop.permute.xlu1 %968  ;;  %v975_v62 = vmul.f32 %v1055_v0, %v967_v11 }
 0x8b5   :  { %v976_v58 = vmul.f32 %v1055_v0, %v969_v39 }
 0x8b6   :  { %v979_v6 = vadd.f32 %v975_v62, %v961_v53 }
 0x8b7   :  { %v980_v56 = vadd.f32 %v976_v58, %v962_v42 }
 0x8b9   :  { %v998_v10 = vadd.f32 %v994_v12, %v980_v56 }
 0x8bb   :  { %v1004_v9 = vadd.f32 %v1057_v55, %v998_v10  ;;  %v983_v3 = vpop.permute.xlu0 %982 }
 0x8bc   :  { %v985_v63 = vpop.permute.xlu1 %984  ;;  %v992_v2 = vmul.f32 %v1056_v33, %v983_v3 }
 0x8bd   :  { %v1008_v24 = vadd.f32 %v1112_v25, %v1004_v9  ;;  %v993_v37 = vmul.f32 %v1056_v33, %v985_v63 }
 0x8be   :  { %v996_v32 = vadd.f32 %v992_v2, %v978_v50 }
 0x8bf   :  { %1012 = vst [vmem:[%s1756_s2 + $0x10] sm:$0xff] %v1008_v24  ;;  %v997_v19 = vadd.f32 %v993_v37, %v979_v6 }
 0x8c0   :  { %v1002_v8 = vadd.f32 %v1057_v55, %v996_v32 }
 0x8c1   :  { %v1003_v17 = vadd.f32 %v1057_v55, %v997_v19 }
 0x8c2   :  { %v1006_v61 = vadd.f32 %v1113_v27, %v1002_v8 }
 0x8c3   :  { %v1007_v26 = vadd.f32 %v1114_v54, %v1003_v17  ;;  %v989_v40 = vpop.permute.xlu0 %988 }
 0x8c4   :  { %1010 = vst [vmem:[%s1756_s2] sm:$0xff] %v1006_v61  ;;  %v995_v44 = vmul.f32 %v1056_v33, %v989_v40 }
 0x8c5   :  { %1011 = vst [vmem:[%s1756_s2 + $0x8] sm:$0xff] %v1007_v26 }
 0x8c6   :  { %v999_v23 = vadd.f32 %v995_v44, %v981_v41 }
 0x8c8   :  { %v1005_v35 = vadd.f32 %v1057_v55, %v999_v23 }
 0x8ca   :  { %v1009_v7 = vadd.f32 %v1115_v45, %v1005_v35 }
 0x8cc   :  { %1013 = vst [vmem:[%s1756_s2 + $0x18] sm:$0xff] %v1009_v7 }

</bundles_post_ra>
